<compile_context>
chip_gen: v5e
topology: v5e:2x2
jax: 0.10.0
libtpu: 0.0.40
codegen_flags: <defaults>
</compile_context>

<pallas_src>
import math

import jax
import jax.numpy as jnp
import numpy as np
from jax.experimental import pallas as pl
from jax.experimental.pallas import tpu as pltpu  # noqa: F401  (TPU backend)

# Model hyper-parameters (consistent with the module's "size"/FFN args).
D_MODEL = 32
N_HEADS = 4
D_HEAD = D_MODEL // N_HEADS
D_FF = 64
LN_EPS = 1e-5          # nn.LayerNorm default
NEG_INF = -1e9         # masked_fill value (matches the PyTorch reference)
CROSS_BATCH = -2e9     # strictly dominates NEG_INF: cross-batch keys can never take weight
SCALE = 1.0 / math.sqrt(D_HEAD)


# ---------------------------------------------------------------------------
# In-kernel helpers (operate on loaded jnp values, traced inside the kernel).
# ---------------------------------------------------------------------------
def _layer_norm(x, gamma, beta):
    # x: (N, D) f32; gamma/beta pre-shaped (1, D) f32 (broadcast hoisted to wrapper).
    mu = jnp.mean(x, axis=-1, keepdims=True)
    var = jnp.mean((x - mu) ** 2, axis=-1, keepdims=True)
    return (x - mu) * jax.lax.rsqrt(var + LN_EPS) * gamma + beta


def _split_heads(t, base):
    # t: (N, E) f32 with head h's columns at [base + h*Dh, base + (h+1)*Dh).
    # Static lane slices + a leading-axis stack -> (H, N, Dh).  Leading-axis packing keeps
    # the later q/k/v handling free of minor-dim splits.
    return jnp.stack(
        [t[:, base + h * D_HEAD: base + (h + 1) * D_HEAD] for h in range(N_HEADS)],
        axis=0)


def _attention(q, k, v, bias, w_o, b_o):
    # q: (H, Nq, Dh) f32; k, v: (H, Nk, Dh) f32 (Nq/Nk = B*S rows, all batches together).
    # bias: (Nq, Nk) additive f32 = user mask + block-diagonal batch isolation, precomputed.
    # w_o: (D, D) bf16; b_o: (1, D) f32.  Returns (Nq, D) f32.
    bf16 = jnp.bfloat16
    s = jnp.einsum("hqd,hkd->hqk", q.astype(bf16), k.astype(bf16),
                   preferred_element_type=jnp.float32)
    s = s + bias[None]                     # 1/sqrt(Dh) already folded into W_q in the wrapper
    m = jnp.max(s, axis=-1, keepdims=True)
    e = jnp.exp(s - m)
    denom = jnp.sum(e, axis=-1, keepdims=True)
    p = (e * pl.reciprocal(denom, approx=True)).astype(bf16)
    ctx = jnp.einsum("hqk,hkd->hqd", p, v.astype(bf16),
                     preferred_element_type=jnp.float32)          # (H, Nq, Dh)
    # Lane-concat per-head pieces -> (Nq, H*Dh), then ONE output-projection matmul.
    ctx_cat = jnp.concatenate([ctx[h] for h in range(N_HEADS)], axis=-1)
    return jnp.dot(ctx_cat.astype(bf16), w_o,
                   preferred_element_type=jnp.float32) + b_o


# ---------------------------------------------------------------------------
# Fused decoder-block kernel (single invocation, whole batch resident in VMEM).
# ---------------------------------------------------------------------------
def decoder_block_kernel(x_ref, mem_ref, tgt_bias_ref, src_bias_ref,
                         w_sa_qkv_ref, b_sa_qkv_ref, w_sa_o_ref, b_sa_o_ref,
                         w_ca_q_ref, b_ca_q_ref, w_ca_kv_ref, b_ca_kv_ref,
                         w_ca_o_ref, b_ca_o_ref,
                         w_ff1_ref, b_ff1_ref, w_ff2_ref, b_ff2_ref,
                         ln_g_ref, ln_b_ref, out_ref):
    f32 = jnp.float32
    bf16 = jnp.bfloat16

    x = x_ref[...]                         # (B*S, D) f32
    mem_bf = mem_ref[...].astype(bf16)     # (B*S_src, D) bf16 (only used at MXU boundary)

    g0, g1, g2 = ln_g_ref[0], ln_g_ref[1], ln_g_ref[2]      # each (1, D)
    be0, be1, be2 = ln_b_ref[0], ln_b_ref[1], ln_b_ref[2]

    # --- Sublayer 1: masked self-attention (one wide QKV matmul) + Add & Norm ---
    qkv = jnp.dot(x.astype(bf16), w_sa_qkv_ref[...],
                  preferred_element_type=f32) + b_sa_qkv_ref[...]       # (B*S, 3D)
    q = _split_heads(qkv, 0)
    k = _split_heads(qkv, D_MODEL)
    v = _split_heads(qkv, 2 * D_MODEL)
    sa = _attention(q, k, v, tgt_bias_ref[...], w_sa_o_ref[...], b_sa_o_ref[...])
    x = _layer_norm(x + sa, g0, be0)

    # --- Sublayer 2: source (cross) attention over memory (wide Q / fused wide KV) ---
    q32 = jnp.dot(x.astype(bf16), w_ca_q_ref[...],
                  preferred_element_type=f32) + b_ca_q_ref[...]          # (B*S, D)
    kv = jnp.dot(mem_bf, w_ca_kv_ref[...],
                 preferred_element_type=f32) + b_ca_kv_ref[...]          # (B*S_src, 2D)
    q = _split_heads(q32, 0)
    k = _split_heads(kv, 0)
    v = _split_heads(kv, D_MODEL)
    ca = _attention(q, k, v, src_bias_ref[...], w_ca_o_ref[...], b_ca_o_ref[...])
    x = _layer_norm(x + ca, g1, be1)

    # --- Sublayer 3: position-wise FFN (whole batch in two wide matmuls) + Add & Norm ---
    h = jnp.dot(x.astype(bf16), w_ff1_ref[...],
                preferred_element_type=f32) + b_ff1_ref[...]
    h = jnp.maximum(h, 0.0).astype(bf16)
    ff = jnp.dot(h, w_ff2_ref[...],
                 preferred_element_type=f32) + b_ff2_ref[...]
    x = _layer_norm(x + ff, g2, be2)

    out_ref[...] = x


# ---------------------------------------------------------------------------
# Hoisted (one-time) preprocessing: weight pre-arrangement and additive biases.
# ---------------------------------------------------------------------------
def prepare_weights(params):
    bf16 = jnp.bfloat16
    f32 = jnp.float32

    wq, wk, wv, wo = (params["w_self"][i] for i in range(4))
    bq, bk, bv, bo = (params["b_self"][i] for i in range(4))
    # Fold the 1/sqrt(Dh) attention scale into the Q projection (prep is hoisted, so free).
    w_sa_qkv = jnp.concatenate([wq * SCALE, wk, wv], axis=1).astype(bf16)      # (D, 3D)
    b_sa_qkv = jnp.concatenate([bq * SCALE, bk, bv]).reshape(1, 3 * D_MODEL).astype(f32)
    w_sa_o = wo.astype(bf16)                                                   # (D, D)
    b_sa_o = bo.reshape(1, D_MODEL).astype(f32)

    cq, ck, cv, co = (params["w_cross"][i] for i in range(4))
    cbq, cbk, cbv, cbo = (params["b_cross"][i] for i in range(4))
    w_ca_q = (cq * SCALE).astype(bf16)                                         # (D, D)
    b_ca_q = (cbq * SCALE).reshape(1, D_MODEL).astype(f32)
    w_ca_kv = jnp.concatenate([ck, cv], axis=1).astype(bf16)                   # (D, 2D)
    b_ca_kv = jnp.concatenate([cbk, cbv]).reshape(1, 2 * D_MODEL).astype(f32)
    w_ca_o = co.astype(bf16)
    b_ca_o = cbo.reshape(1, D_MODEL).astype(f32)

    w_ff1 = params["w_ff1"].astype(bf16)
    b_ff1 = params["b_ff1"].reshape(1, D_FF).astype(f32)
    w_ff2 = params["w_ff2"].astype(bf16)
    b_ff2 = params["b_ff2"].reshape(1, D_MODEL).astype(f32)

    ln_g = params["ln_gamma"].reshape(3, 1, D_MODEL).astype(f32)
    ln_b = params["ln_beta"].reshape(3, 1, D_MODEL).astype(f32)

    return (w_sa_qkv, b_sa_qkv, w_sa_o, b_sa_o,
            w_ca_q, b_ca_q, w_ca_kv, b_ca_kv, w_ca_o, b_ca_o,
            w_ff1, b_ff1, w_ff2, b_ff2, ln_g, ln_b)


def _block_diag_bias(mask):
    # mask: (B, Sq, Sk) int -> (B*Sq, B*Sk) additive f32.  Intra-batch blocks carry the user
    # mask (0 / NEG_INF, matching masked_fill); cross-batch blocks carry a strictly smaller
    # constant so batches never mix even when a row is fully masked.
    B, Sq, Sk = mask.shape
    intra = jnp.where(mask != 0, 0.0, NEG_INF).astype(jnp.float32)
    rows = []
    for b in range(B):
        blocks = [jnp.full((Sq, Sk), CROSS_BATCH, jnp.float32)] * B
        blocks = list(blocks)
        blocks[b] = intra[b]
        rows.append(jnp.concatenate(blocks, axis=1))
    return jnp.concatenate(rows, axis=0)


def prepare_biases(tgt_mask, src_mask):
    return _block_diag_bias(tgt_mask), _block_diag_bias(src_mask)


# ---------------------------------------------------------------------------
# Per-call jitted wrapper: reshape + single pallas_call.
# ---------------------------------------------------------------------------
@jax.jit
def decoder_block_pallas(x, memory, tgt_bias, src_bias, weights):
    B, S, D = x.shape
    S_src = memory.shape[1]
    x2 = x.reshape(B * S, D).astype(jnp.float32)
    mem2 = memory.reshape(B * S_src, D).astype(jnp.float32)
    out = pl.pallas_call(
        decoder_block_kernel,
        out_shape=jax.ShapeDtypeStruct((B * S, D), jnp.float32),
    )(x2, mem2, tgt_bias, src_bias, *weights)
    return out.reshape(B, S, D)


# ---------------------------------------------------------------------------
# Pure-JAX f32 reference (same math, PyTorch-style masked_fill) for a sanity check.
# ---------------------------------------------------------------------------
def decoder_block_ref(x, memory, src_mask, tgt_mask, params):
    def mha(q_in, k_in, v_in, w, b, mask):
        q = q_in @ w[0] + b[0]
        k = k_in @ w[1] + b[1]
        v = v_in @ w[2] + b[2]
        B_, Sq, _ = q.shape
        Sk = k.shape[1]
        qh = q.reshape(B_, Sq, N_HEADS, D_HEAD)
        kh = k.reshape(B_, Sk, N_HEADS, D_HEAD)
        vh = v.reshape(B_, Sk, N_HEADS, D_HEAD)
        scores = jnp.einsum("bqhd,bkhd->bhqk", qh, kh) / math.sqrt(D_HEAD)
        scores = jnp.where(mask[:, None, :, :] != 0, scores, NEG_INF)
        p = jax.nn.softmax(scores, axis=-1)
        ctx = jnp.einsum("bhqk,bkhd->bqhd", p, vh).reshape(B_, Sq, D_MODEL)
        return ctx @ w[3] + b[3]

    def ln(x_, g, b_):
        mu = jnp.mean(x_, axis=-1, keepdims=True)
        var = jnp.mean((x_ - mu) ** 2, axis=-1, keepdims=True)
        return (x_ - mu) * jax.lax.rsqrt(var + LN_EPS) * g + b_

    g, b_ = params["ln_gamma"], params["ln_beta"]
    x = ln(x + mha(x, x, x, params["w_self"], params["b_self"], tgt_mask), g[0], b_[0])
    x = ln(x + mha(x, memory, memory, params["w_cross"], params["b_cross"], src_mask), g[1], b_[1])
    h = jnp.maximum(x @ params["w_ff1"] + params["b_ff1"], 0.0)
    x = ln(x + (h @ params["w_ff2"] + params["b_ff2"]), g[2], b_[2])
    return x


# ---------------------------------------------------------------------------
# Deterministic parameter init (synthetic; shapes follow the PyTorch module).
# ---------------------------------------------------------------------------
def init_params(key):
    ks = jax.random.split(key, 8)
    lin = lambda k, fan_in, shape: (jax.random.normal(k, shape, jnp.float32) / math.sqrt(fan_in))
    return {
        "w_self":  lin(ks[0], D_MODEL, (4, D_MODEL, D_MODEL)),
        "b_self":  0.01 * jax.random.normal(ks[1], (4, D_MODEL), jnp.float32),
        "w_cross": lin(ks[2], D_MODEL, (4, D_MODEL, D_MODEL)),
        "b_cross": 0.01 * jax.random.normal(ks[3], (4, D_MODEL), jnp.float32),
        "w_ff1":   lin(ks[4], D_MODEL, (D_MODEL, D_FF)),
        "b_ff1":   0.01 * jax.random.normal(ks[5], (1, D_FF), jnp.float32),
        "w_ff2":   lin(ks[6], D_FF, (D_FF, D_MODEL)),
        "b_ff2":   0.01 * jax.random.normal(ks[7], (1, D_MODEL), jnp.float32),
        "ln_gamma": jnp.ones((3, D_MODEL), jnp.float32),
        "ln_beta":  jnp.zeros((3, D_MODEL), jnp.float32),
    }


if __name__ == "__main__":
    B, S, S_SRC = 2, 8, 8
    key = jax.random.PRNGKey(0)
    k_x, k_mem, k_p = jax.random.split(key, 3)

    x = jax.random.normal(k_x, (B, S, D_MODEL), jnp.float32)
    memory = jax.random.normal(k_mem, (B, S_SRC, D_MODEL), jnp.float32)

    # tgt_mask: causal; src_mask: per-batch source lengths [8, 6].
    tgt_mask = jnp.broadcast_to(
        jnp.tril(jnp.ones((S, S), jnp.int32))[None, :, :], (B, S, S)
    ).astype(jnp.int32)
    src_lens = jnp.array([S_SRC, S_SRC - 2], jnp.int32)
    src_mask = (jnp.arange(S_SRC)[None, None, :] < src_lens[:, None, None])
    src_mask = jnp.broadcast_to(src_mask, (B, S, S_SRC)).astype(jnp.int32)

    params = init_params(k_p)

    # Hoisted one-time preprocessing (review item 7): weights + additive block-diagonal biases.
    weights = prepare_weights(params)
    tgt_bias, src_bias = prepare_biases(tgt_mask, src_mask)

    out = decoder_block_pallas(x, memory, tgt_bias, src_bias, weights)
    out = jax.block_until_ready(out)

    ref = decoder_block_ref(x, memory, src_mask, tgt_mask, params)
    # bf16-at-MXU kernel vs. f32 reference: 2e-2 tolerance.
    np.testing.assert_allclose(np.asarray(out), np.asarray(ref), atol=2e-2, rtol=2e-2)

    print("KERNEL_OK")
</pallas_src>

<mosaic_0001>
module attributes {stable_mosaic.version = 11 : i64} {
  func.func @decoder_block_kernel(%arg0: memref<16x32xf32, #tpu.memory_space<vmem>>, %arg1: memref<16x32xf32, #tpu.memory_space<vmem>>, %arg2: memref<16x16xf32, #tpu.memory_space<vmem>>, %arg3: memref<16x16xf32, #tpu.memory_space<vmem>>, %arg4: memref<32x96xbf16, #tpu.memory_space<vmem>>, %arg5: memref<1x96xf32, #tpu.memory_space<vmem>>, %arg6: memref<32x32xbf16, #tpu.memory_space<vmem>>, %arg7: memref<1x32xf32, #tpu.memory_space<vmem>>, %arg8: memref<32x32xbf16, #tpu.memory_space<vmem>>, %arg9: memref<1x32xf32, #tpu.memory_space<vmem>>, %arg10: memref<32x64xbf16, #tpu.memory_space<vmem>>, %arg11: memref<1x64xf32, #tpu.memory_space<vmem>>, %arg12: memref<32x32xbf16, #tpu.memory_space<vmem>>, %arg13: memref<1x32xf32, #tpu.memory_space<vmem>>, %arg14: memref<32x64xbf16, #tpu.memory_space<vmem>>, %arg15: memref<1x64xf32, #tpu.memory_space<vmem>>, %arg16: memref<64x32xbf16, #tpu.memory_space<vmem>>, %arg17: memref<1x32xf32, #tpu.memory_space<vmem>>, %arg18: memref<3x1x32xf32, #tpu.memory_space<vmem>>, %arg19: memref<3x1x32xf32, #tpu.memory_space<vmem>>, %arg20: memref<16x32xf32, #tpu.memory_space<vmem>>) attributes {dimension_semantics = [], scalar_prefetch = 0 : i64, scratch_operands = 0 : i64, tpu.core_type = #tpu.core_type<tc>} {
    %c0 = arith.constant 0 : index
    %c0_0 = arith.constant 0 : index
    %0 = vector.load %arg0[%c0, %c0_0] : memref<16x32xf32, #tpu.memory_space<vmem>>, vector<16x32xf32>
    %c0_1 = arith.constant 0 : index
    %c0_2 = arith.constant 0 : index
    %1 = vector.load %arg1[%c0_1, %c0_2] : memref<16x32xf32, #tpu.memory_space<vmem>>, vector<16x32xf32>
    %2 = arith.truncf %1 : vector<16x32xf32> to vector<16x32xbf16>
    %c0_3 = arith.constant 0 : index
    %c0_4 = arith.constant 0 : index
    %c0_5 = arith.constant 0 : index
    %3 = vector.load %arg18[%c0_3, %c0_4, %c0_5] : memref<3x1x32xf32, #tpu.memory_space<vmem>>, vector<1x1x32xf32>
    %4 = vector.shape_cast %3 : vector<1x1x32xf32> to vector<1x32xf32>
    %c1 = arith.constant 1 : index
    %c0_6 = arith.constant 0 : index
    %c0_7 = arith.constant 0 : index
    %5 = vector.load %arg18[%c1, %c0_6, %c0_7] : memref<3x1x32xf32, #tpu.memory_space<vmem>>, vector<1x1x32xf32>
    %6 = vector.shape_cast %5 : vector<1x1x32xf32> to vector<1x32xf32>
    %c2 = arith.constant 2 : index
    %c0_8 = arith.constant 0 : index
    %c0_9 = arith.constant 0 : index
    %7 = vector.load %arg18[%c2, %c0_8, %c0_9] : memref<3x1x32xf32, #tpu.memory_space<vmem>>, vector<1x1x32xf32>
    %8 = vector.shape_cast %7 : vector<1x1x32xf32> to vector<1x32xf32>
    %c0_10 = arith.constant 0 : index
    %c0_11 = arith.constant 0 : index
    %c0_12 = arith.constant 0 : index
    %9 = vector.load %arg19[%c0_10, %c0_11, %c0_12] : memref<3x1x32xf32, #tpu.memory_space<vmem>>, vector<1x1x32xf32>
    %10 = vector.shape_cast %9 : vector<1x1x32xf32> to vector<1x32xf32>
    %c1_13 = arith.constant 1 : index
    %c0_14 = arith.constant 0 : index
    %c0_15 = arith.constant 0 : index
    %11 = vector.load %arg19[%c1_13, %c0_14, %c0_15] : memref<3x1x32xf32, #tpu.memory_space<vmem>>, vector<1x1x32xf32>
    %12 = vector.shape_cast %11 : vector<1x1x32xf32> to vector<1x32xf32>
    %c2_16 = arith.constant 2 : index
    %c0_17 = arith.constant 0 : index
    %c0_18 = arith.constant 0 : index
    %13 = vector.load %arg19[%c2_16, %c0_17, %c0_18] : memref<3x1x32xf32, #tpu.memory_space<vmem>>, vector<1x1x32xf32>
    %14 = vector.shape_cast %13 : vector<1x1x32xf32> to vector<1x32xf32>
    %15 = arith.truncf %0 : vector<16x32xf32> to vector<16x32xbf16>
    %c0_19 = arith.constant 0 : index
    %c0_20 = arith.constant 0 : index
    %16 = vector.load %arg4[%c0_19, %c0_20] : memref<32x96xbf16, #tpu.memory_space<vmem>>, vector<32x96xbf16>
    %cst = arith.constant dense<0.000000e+00> : vector<16x96xf32>
    %17 = tpu.matmul %15, %16, %cst {dimension_numbers = #tpu.dot_dimension_numbers<[1], [0], [0], [1], [0, 0, 1, 1], [], []>} : vector<16x32xbf16>, vector<32x96xbf16>, vector<16x96xf32> -> vector<16x96xf32>
    %c0_21 = arith.constant 0 : index
    %c0_22 = arith.constant 0 : index
    %18 = vector.load %arg5[%c0_21, %c0_22] : memref<1x96xf32, #tpu.memory_space<vmem>>, vector<1x96xf32>
    %19 = vector.broadcast %18 : vector<1x96xf32> to vector<16x96xf32>
    %20 = arith.addf %17, %19 : vector<16x96xf32>
    %21 = vector.extract_strided_slice %20 {offsets = [0, 0], sizes = [16, 8], strides = [1, 1]} : vector<16x96xf32> to vector<16x8xf32>
    %22 = vector.extract_strided_slice %20 {offsets = [0, 8], sizes = [16, 8], strides = [1, 1]} : vector<16x96xf32> to vector<16x8xf32>
    %23 = vector.extract_strided_slice %20 {offsets = [0, 16], sizes = [16, 8], strides = [1, 1]} : vector<16x96xf32> to vector<16x8xf32>
    %24 = vector.extract_strided_slice %20 {offsets = [0, 24], sizes = [16, 8], strides = [1, 1]} : vector<16x96xf32> to vector<16x8xf32>
    %25 = vector.shape_cast %21 : vector<16x8xf32> to vector<1x16x8xf32>
    %26 = vector.shape_cast %22 : vector<16x8xf32> to vector<1x16x8xf32>
    %27 = vector.shape_cast %23 : vector<16x8xf32> to vector<1x16x8xf32>
    %28 = vector.shape_cast %24 : vector<16x8xf32> to vector<1x16x8xf32>
    %29 = tpu.concatenate %25, %26, %27, %28 in 0 : vector<1x16x8xf32>, vector<1x16x8xf32>, vector<1x16x8xf32>, vector<1x16x8xf32> -> vector<4x16x8xf32>
    %30 = vector.extract_strided_slice %20 {offsets = [0, 32], sizes = [16, 8], strides = [1, 1]} : vector<16x96xf32> to vector<16x8xf32>
    %31 = vector.extract_strided_slice %20 {offsets = [0, 40], sizes = [16, 8], strides = [1, 1]} : vector<16x96xf32> to vector<16x8xf32>
    %32 = vector.extract_strided_slice %20 {offsets = [0, 48], sizes = [16, 8], strides = [1, 1]} : vector<16x96xf32> to vector<16x8xf32>
    %33 = vector.extract_strided_slice %20 {offsets = [0, 56], sizes = [16, 8], strides = [1, 1]} : vector<16x96xf32> to vector<16x8xf32>
    %34 = vector.shape_cast %30 : vector<16x8xf32> to vector<1x16x8xf32>
    %35 = vector.shape_cast %31 : vector<16x8xf32> to vector<1x16x8xf32>
    %36 = vector.shape_cast %32 : vector<16x8xf32> to vector<1x16x8xf32>
    %37 = vector.shape_cast %33 : vector<16x8xf32> to vector<1x16x8xf32>
    %38 = tpu.concatenate %34, %35, %36, %37 in 0 : vector<1x16x8xf32>, vector<1x16x8xf32>, vector<1x16x8xf32>, vector<1x16x8xf32> -> vector<4x16x8xf32>
    %39 = vector.extract_strided_slice %20 {offsets = [0, 64], sizes = [16, 8], strides = [1, 1]} : vector<16x96xf32> to vector<16x8xf32>
    %40 = vector.extract_strided_slice %20 {offsets = [0, 72], sizes = [16, 8], strides = [1, 1]} : vector<16x96xf32> to vector<16x8xf32>
    %41 = vector.extract_strided_slice %20 {offsets = [0, 80], sizes = [16, 8], strides = [1, 1]} : vector<16x96xf32> to vector<16x8xf32>
    %42 = vector.extract_strided_slice %20 {offsets = [0, 88], sizes = [16, 8], strides = [1, 1]} : vector<16x96xf32> to vector<16x8xf32>
    %43 = vector.shape_cast %39 : vector<16x8xf32> to vector<1x16x8xf32>
    %44 = vector.shape_cast %40 : vector<16x8xf32> to vector<1x16x8xf32>
    %45 = vector.shape_cast %41 : vector<16x8xf32> to vector<1x16x8xf32>
    %46 = vector.shape_cast %42 : vector<16x8xf32> to vector<1x16x8xf32>
    %47 = tpu.concatenate %43, %44, %45, %46 in 0 : vector<1x16x8xf32>, vector<1x16x8xf32>, vector<1x16x8xf32>, vector<1x16x8xf32> -> vector<4x16x8xf32>
    %c0_23 = arith.constant 0 : index
    %c0_24 = arith.constant 0 : index
    %48 = vector.load %arg2[%c0_23, %c0_24] : memref<16x16xf32, #tpu.memory_space<vmem>>, vector<16x16xf32>
    %c0_25 = arith.constant 0 : index
    %c0_26 = arith.constant 0 : index
    %49 = vector.load %arg6[%c0_25, %c0_26] : memref<32x32xbf16, #tpu.memory_space<vmem>>, vector<32x32xbf16>
    %c0_27 = arith.constant 0 : index
    %c0_28 = arith.constant 0 : index
    %50 = vector.load %arg7[%c0_27, %c0_28] : memref<1x32xf32, #tpu.memory_space<vmem>>, vector<1x32xf32>
    %51 = arith.truncf %29 : vector<4x16x8xf32> to vector<4x16x8xbf16>
    %52 = arith.truncf %38 : vector<4x16x8xf32> to vector<4x16x8xbf16>
    "tpu.trace_start"() <{level = 10 : i32, message = "hqd,hkd->hqk"}> : () -> ()
    %cst_29 = arith.constant dense<0.000000e+00> : vector<4x16x16xf32>
    %53 = tpu.matmul %51, %52, %cst_29 {dimension_numbers = #tpu.dot_dimension_numbers<[2], [2], [1], [1], [0, 0, 0, 1, 1, 1], [0], [0]>} : vector<4x16x8xbf16>, vector<4x16x8xbf16>, vector<4x16x16xf32> -> vector<4x16x16xf32>
    "tpu.trace_stop"() : () -> ()
    %54 = vector.shape_cast %48 : vector<16x16xf32> to vector<1x16x16xf32>
    %55 = vector.broadcast %54 : vector<1x16x16xf32> to vector<4x16x16xf32>
    %56 = arith.addf %53, %55 : vector<4x16x16xf32>
    %cst_30 = arith.constant dense<0xFF800000> : vector<4x16xf32>
    %57 = vector.multi_reduction <maximumf>, %56, %cst_30 [2] : vector<4x16x16xf32> to vector<4x16xf32>
    %58 = vector.shape_cast %57 : vector<4x16xf32> to vector<4x16x1xf32>
    %59 = vector.broadcast %58 : vector<4x16x1xf32> to vector<4x16x16xf32>
    %60 = arith.subf %56, %59 : vector<4x16x16xf32>
    %61 = math.exp %60 : vector<4x16x16xf32>
    %cst_31 = arith.constant dense<0.000000e+00> : vector<4x16xf32>
    %62 = vector.multi_reduction <add>, %61, %cst_31 [2] : vector<4x16x16xf32> to vector<4x16xf32>
    %63 = vector.shape_cast %62 : vector<4x16xf32> to vector<4x16x1xf32>
    %64 = tpu.reciprocal %63 {approx = true} : vector<4x16x1xf32> -> vector<4x16x1xf32>
    %65 = vector.broadcast %64 : vector<4x16x1xf32> to vector<4x16x16xf32>
    %66 = arith.mulf %61, %65 : vector<4x16x16xf32>
    %67 = arith.truncf %66 : vector<4x16x16xf32> to vector<4x16x16xbf16>
    %68 = arith.truncf %47 : vector<4x16x8xf32> to vector<4x16x8xbf16>
    "tpu.trace_start"() <{level = 10 : i32, message = "hqk,hkd->hqd"}> : () -> ()
    %cst_32 = arith.constant dense<0.000000e+00> : vector<4x16x8xf32>
    %69 = tpu.matmul %67, %68, %cst_32 {dimension_numbers = #tpu.dot_dimension_numbers<[2], [1], [1], [2], [0, 0, 0, 1, 1, 2], [0], [0]>} : vector<4x16x16xbf16>, vector<4x16x8xbf16>, vector<4x16x8xf32> -> vector<4x16x8xf32>
    "tpu.trace_stop"() : () -> ()
    %70 = vector.extract_strided_slice %69 {offsets = [0, 0, 0], sizes = [1, 16, 8], strides = [1, 1, 1]} : vector<4x16x8xf32> to vector<1x16x8xf32>
    %71 = vector.shape_cast %70 : vector<1x16x8xf32> to vector<16x8xf32>
    %72 = vector.extract_strided_slice %69 {offsets = [1, 0, 0], sizes = [1, 16, 8], strides = [1, 1, 1]} : vector<4x16x8xf32> to vector<1x16x8xf32>
    %73 = vector.shape_cast %72 : vector<1x16x8xf32> to vector<16x8xf32>
    %74 = vector.extract_strided_slice %69 {offsets = [2, 0, 0], sizes = [1, 16, 8], strides = [1, 1, 1]} : vector<4x16x8xf32> to vector<1x16x8xf32>
    %75 = vector.shape_cast %74 : vector<1x16x8xf32> to vector<16x8xf32>
    %76 = vector.extract_strided_slice %69 {offsets = [3, 0, 0], sizes = [1, 16, 8], strides = [1, 1, 1]} : vector<4x16x8xf32> to vector<1x16x8xf32>
    %77 = vector.shape_cast %76 : vector<1x16x8xf32> to vector<16x8xf32>
    %78 = tpu.concatenate %71, %73, %75, %77 in 1 : vector<16x8xf32>, vector<16x8xf32>, vector<16x8xf32>, vector<16x8xf32> -> vector<16x32xf32>
    %79 = arith.truncf %78 : vector<16x32xf32> to vector<16x32xbf16>
    %cst_33 = arith.constant dense<0.000000e+00> : vector<16x32xf32>
    %80 = tpu.matmul %79, %49, %cst_33 {dimension_numbers = #tpu.dot_dimension_numbers<[1], [0], [0], [1], [0, 0, 1, 1], [], []>} : vector<16x32xbf16>, vector<32x32xbf16>, vector<16x32xf32> -> vector<16x32xf32>
    %81 = vector.broadcast %50 : vector<1x32xf32> to vector<16x32xf32>
    %82 = arith.addf %80, %81 : vector<16x32xf32>
    %83 = arith.addf %0, %82 : vector<16x32xf32>
    %cst_34 = arith.constant dense<0.000000e+00> : vector<16xf32>
    %84 = vector.multi_reduction <add>, %83, %cst_34 [1] : vector<16x32xf32> to vector<16xf32>
    %85 = vector.shape_cast %84 : vector<16xf32> to vector<16x1xf32>
    %cst_35 = arith.constant 3.200000e+01 : f32
    %86 = vector.broadcast %cst_35 : f32 to vector<16x1xf32>
    %87 = arith.divf %85, %86 : vector<16x1xf32>
    %88 = vector.broadcast %87 : vector<16x1xf32> to vector<16x32xf32>
    %89 = arith.subf %83, %88 : vector<16x32xf32>
    %90 = arith.mulf %89, %89 : vector<16x32xf32>
    %cst_36 = arith.constant dense<0.000000e+00> : vector<16xf32>
    %91 = vector.multi_reduction <add>, %90, %cst_36 [1] : vector<16x32xf32> to vector<16xf32>
    %92 = vector.shape_cast %91 : vector<16xf32> to vector<16x1xf32>
    %cst_37 = arith.constant 3.200000e+01 : f32
    %93 = vector.broadcast %cst_37 : f32 to vector<16x1xf32>
    %94 = arith.divf %92, %93 : vector<16x1xf32>
    %95 = vector.broadcast %87 : vector<16x1xf32> to vector<16x32xf32>
    %96 = arith.subf %83, %95 : vector<16x32xf32>
    %cst_38 = arith.constant 9.99999974E-6 : f32
    %97 = vector.broadcast %cst_38 : f32 to vector<16x1xf32>
    %98 = arith.addf %94, %97 : vector<16x1xf32>
    %99 = math.rsqrt %98 : vector<16x1xf32>
    %100 = vector.broadcast %99 : vector<16x1xf32> to vector<16x32xf32>
    %101 = arith.mulf %96, %100 : vector<16x32xf32>
    %102 = vector.broadcast %4 : vector<1x32xf32> to vector<16x32xf32>
    %103 = arith.mulf %101, %102 : vector<16x32xf32>
    %104 = vector.broadcast %10 : vector<1x32xf32> to vector<16x32xf32>
    %105 = arith.addf %103, %104 : vector<16x32xf32>
    %106 = arith.truncf %105 : vector<16x32xf32> to vector<16x32xbf16>
    %c0_39 = arith.constant 0 : index
    %c0_40 = arith.constant 0 : index
    %107 = vector.load %arg8[%c0_39, %c0_40] : memref<32x32xbf16, #tpu.memory_space<vmem>>, vector<32x32xbf16>
    %cst_41 = arith.constant dense<0.000000e+00> : vector<16x32xf32>
    %108 = tpu.matmul %106, %107, %cst_41 {dimension_numbers = #tpu.dot_dimension_numbers<[1], [0], [0], [1], [0, 0, 1, 1], [], []>} : vector<16x32xbf16>, vector<32x32xbf16>, vector<16x32xf32> -> vector<16x32xf32>
    %c0_42 = arith.constant 0 : index
    %c0_43 = arith.constant 0 : index
    %109 = vector.load %arg9[%c0_42, %c0_43] : memref<1x32xf32, #tpu.memory_space<vmem>>, vector<1x32xf32>
    %110 = vector.broadcast %109 : vector<1x32xf32> to vector<16x32xf32>
    %111 = arith.addf %108, %110 : vector<16x32xf32>
    %c0_44 = arith.constant 0 : index
    %c0_45 = arith.constant 0 : index
    %112 = vector.load %arg10[%c0_44, %c0_45] : memref<32x64xbf16, #tpu.memory_space<vmem>>, vector<32x64xbf16>
    %cst_46 = arith.constant dense<0.000000e+00> : vector<16x64xf32>
    %113 = tpu.matmul %2, %112, %cst_46 {dimension_numbers = #tpu.dot_dimension_numbers<[1], [0], [0], [1], [0, 0, 1, 1], [], []>} : vector<16x32xbf16>, vector<32x64xbf16>, vector<16x64xf32> -> vector<16x64xf32>
    %c0_47 = arith.constant 0 : index
    %c0_48 = arith.constant 0 : index
    %114 = vector.load %arg11[%c0_47, %c0_48] : memref<1x64xf32, #tpu.memory_space<vmem>>, vector<1x64xf32>
    %115 = vector.broadcast %114 : vector<1x64xf32> to vector<16x64xf32>
    %116 = arith.addf %113, %115 : vector<16x64xf32>
    %117 = vector.extract_strided_slice %111 {offsets = [0, 0], sizes = [16, 8], strides = [1, 1]} : vector<16x32xf32> to vector<16x8xf32>
    %118 = vector.extract_strided_slice %111 {offsets = [0, 8], sizes = [16, 8], strides = [1, 1]} : vector<16x32xf32> to vector<16x8xf32>
    %119 = vector.extract_strided_slice %111 {offsets = [0, 16], sizes = [16, 8], strides = [1, 1]} : vector<16x32xf32> to vector<16x8xf32>
    %120 = vector.extract_strided_slice %111 {offsets = [0, 24], sizes = [16, 8], strides = [1, 1]} : vector<16x32xf32> to vector<16x8xf32>
    %121 = vector.shape_cast %117 : vector<16x8xf32> to vector<1x16x8xf32>
    %122 = vector.shape_cast %118 : vector<16x8xf32> to vector<1x16x8xf32>
    %123 = vector.shape_cast %119 : vector<16x8xf32> to vector<1x16x8xf32>
    %124 = vector.shape_cast %120 : vector<16x8xf32> to vector<1x16x8xf32>
    %125 = tpu.concatenate %121, %122, %123, %124 in 0 : vector<1x16x8xf32>, vector<1x16x8xf32>, vector<1x16x8xf32>, vector<1x16x8xf32> -> vector<4x16x8xf32>
    %126 = vector.extract_strided_slice %116 {offsets = [0, 0], sizes = [16, 8], strides = [1, 1]} : vector<16x64xf32> to vector<16x8xf32>
    %127 = vector.extract_strided_slice %116 {offsets = [0, 8], sizes = [16, 8], strides = [1, 1]} : vector<16x64xf32> to vector<16x8xf32>
    %128 = vector.extract_strided_slice %116 {offsets = [0, 16], sizes = [16, 8], strides = [1, 1]} : vector<16x64xf32> to vector<16x8xf32>
    %129 = vector.extract_strided_slice %116 {offsets = [0, 24], sizes = [16, 8], strides = [1, 1]} : vector<16x64xf32> to vector<16x8xf32>
    %130 = vector.shape_cast %126 : vector<16x8xf32> to vector<1x16x8xf32>
    %131 = vector.shape_cast %127 : vector<16x8xf32> to vector<1x16x8xf32>
    %132 = vector.shape_cast %128 : vector<16x8xf32> to vector<1x16x8xf32>
    %133 = vector.shape_cast %129 : vector<16x8xf32> to vector<1x16x8xf32>
    %134 = tpu.concatenate %130, %131, %132, %133 in 0 : vector<1x16x8xf32>, vector<1x16x8xf32>, vector<1x16x8xf32>, vector<1x16x8xf32> -> vector<4x16x8xf32>
    %135 = vector.extract_strided_slice %116 {offsets = [0, 32], sizes = [16, 8], strides = [1, 1]} : vector<16x64xf32> to vector<16x8xf32>
    %136 = vector.extract_strided_slice %116 {offsets = [0, 40], sizes = [16, 8], strides = [1, 1]} : vector<16x64xf32> to vector<16x8xf32>
    %137 = vector.extract_strided_slice %116 {offsets = [0, 48], sizes = [16, 8], strides = [1, 1]} : vector<16x64xf32> to vector<16x8xf32>
    %138 = vector.extract_strided_slice %116 {offsets = [0, 56], sizes = [16, 8], strides = [1, 1]} : vector<16x64xf32> to vector<16x8xf32>
    %139 = vector.shape_cast %135 : vector<16x8xf32> to vector<1x16x8xf32>
    %140 = vector.shape_cast %136 : vector<16x8xf32> to vector<1x16x8xf32>
    %141 = vector.shape_cast %137 : vector<16x8xf32> to vector<1x16x8xf32>
    %142 = vector.shape_cast %138 : vector<16x8xf32> to vector<1x16x8xf32>
    %143 = tpu.concatenate %139, %140, %141, %142 in 0 : vector<1x16x8xf32>, vector<1x16x8xf32>, vector<1x16x8xf32>, vector<1x16x8xf32> -> vector<4x16x8xf32>
    %c0_49 = arith.constant 0 : index
    %c0_50 = arith.constant 0 : index
    %144 = vector.load %arg3[%c0_49, %c0_50] : memref<16x16xf32, #tpu.memory_space<vmem>>, vector<16x16xf32>
    %c0_51 = arith.constant 0 : index
    %c0_52 = arith.constant 0 : index
    %145 = vector.load %arg12[%c0_51, %c0_52] : memref<32x32xbf16, #tpu.memory_space<vmem>>, vector<32x32xbf16>
    %c0_53 = arith.constant 0 : index
    %c0_54 = arith.constant 0 : index
    %146 = vector.load %arg13[%c0_53, %c0_54] : memref<1x32xf32, #tpu.memory_space<vmem>>, vector<1x32xf32>
    %147 = arith.truncf %125 : vector<4x16x8xf32> to vector<4x16x8xbf16>
    %148 = arith.truncf %134 : vector<4x16x8xf32> to vector<4x16x8xbf16>
    "tpu.trace_start"() <{level = 10 : i32, message = "hqd,hkd->hqk"}> : () -> ()
    %cst_55 = arith.constant dense<0.000000e+00> : vector<4x16x16xf32>
    %149 = tpu.matmul %147, %148, %cst_55 {dimension_numbers = #tpu.dot_dimension_numbers<[2], [2], [1], [1], [0, 0, 0, 1, 1, 1], [0], [0]>} : vector<4x16x8xbf16>, vector<4x16x8xbf16>, vector<4x16x16xf32> -> vector<4x16x16xf32>
    "tpu.trace_stop"() : () -> ()
    %150 = vector.shape_cast %144 : vector<16x16xf32> to vector<1x16x16xf32>
    %151 = vector.broadcast %150 : vector<1x16x16xf32> to vector<4x16x16xf32>
    %152 = arith.addf %149, %151 : vector<4x16x16xf32>
    %cst_56 = arith.constant dense<0xFF800000> : vector<4x16xf32>
    %153 = vector.multi_reduction <maximumf>, %152, %cst_56 [2] : vector<4x16x16xf32> to vector<4x16xf32>
    %154 = vector.shape_cast %153 : vector<4x16xf32> to vector<4x16x1xf32>
    %155 = vector.broadcast %154 : vector<4x16x1xf32> to vector<4x16x16xf32>
    %156 = arith.subf %152, %155 : vector<4x16x16xf32>
    %157 = math.exp %156 : vector<4x16x16xf32>
    %cst_57 = arith.constant dense<0.000000e+00> : vector<4x16xf32>
    %158 = vector.multi_reduction <add>, %157, %cst_57 [2] : vector<4x16x16xf32> to vector<4x16xf32>
    %159 = vector.shape_cast %158 : vector<4x16xf32> to vector<4x16x1xf32>
    %160 = tpu.reciprocal %159 {approx = true} : vector<4x16x1xf32> -> vector<4x16x1xf32>
    %161 = vector.broadcast %160 : vector<4x16x1xf32> to vector<4x16x16xf32>
    %162 = arith.mulf %157, %161 : vector<4x16x16xf32>
    %163 = arith.truncf %162 : vector<4x16x16xf32> to vector<4x16x16xbf16>
    %164 = arith.truncf %143 : vector<4x16x8xf32> to vector<4x16x8xbf16>
    "tpu.trace_start"() <{level = 10 : i32, message = "hqk,hkd->hqd"}> : () -> ()
    %cst_58 = arith.constant dense<0.000000e+00> : vector<4x16x8xf32>
    %165 = tpu.matmul %163, %164, %cst_58 {dimension_numbers = #tpu.dot_dimension_numbers<[2], [1], [1], [2], [0, 0, 0, 1, 1, 2], [0], [0]>} : vector<4x16x16xbf16>, vector<4x16x8xbf16>, vector<4x16x8xf32> -> vector<4x16x8xf32>
    "tpu.trace_stop"() : () -> ()
    %166 = vector.extract_strided_slice %165 {offsets = [0, 0, 0], sizes = [1, 16, 8], strides = [1, 1, 1]} : vector<4x16x8xf32> to vector<1x16x8xf32>
    %167 = vector.shape_cast %166 : vector<1x16x8xf32> to vector<16x8xf32>
    %168 = vector.extract_strided_slice %165 {offsets = [1, 0, 0], sizes = [1, 16, 8], strides = [1, 1, 1]} : vector<4x16x8xf32> to vector<1x16x8xf32>
    %169 = vector.shape_cast %168 : vector<1x16x8xf32> to vector<16x8xf32>
    %170 = vector.extract_strided_slice %165 {offsets = [2, 0, 0], sizes = [1, 16, 8], strides = [1, 1, 1]} : vector<4x16x8xf32> to vector<1x16x8xf32>
    %171 = vector.shape_cast %170 : vector<1x16x8xf32> to vector<16x8xf32>
    %172 = vector.extract_strided_slice %165 {offsets = [3, 0, 0], sizes = [1, 16, 8], strides = [1, 1, 1]} : vector<4x16x8xf32> to vector<1x16x8xf32>
    %173 = vector.shape_cast %172 : vector<1x16x8xf32> to vector<16x8xf32>
    %174 = tpu.concatenate %167, %169, %171, %173 in 1 : vector<16x8xf32>, vector<16x8xf32>, vector<16x8xf32>, vector<16x8xf32> -> vector<16x32xf32>
    %175 = arith.truncf %174 : vector<16x32xf32> to vector<16x32xbf16>
    %cst_59 = arith.constant dense<0.000000e+00> : vector<16x32xf32>
    %176 = tpu.matmul %175, %145, %cst_59 {dimension_numbers = #tpu.dot_dimension_numbers<[1], [0], [0], [1], [0, 0, 1, 1], [], []>} : vector<16x32xbf16>, vector<32x32xbf16>, vector<16x32xf32> -> vector<16x32xf32>
    %177 = vector.broadcast %146 : vector<1x32xf32> to vector<16x32xf32>
    %178 = arith.addf %176, %177 : vector<16x32xf32>
    %179 = arith.addf %105, %178 : vector<16x32xf32>
    %cst_60 = arith.constant dense<0.000000e+00> : vector<16xf32>
    %180 = vector.multi_reduction <add>, %179, %cst_60 [1] : vector<16x32xf32> to vector<16xf32>
    %181 = vector.shape_cast %180 : vector<16xf32> to vector<16x1xf32>
    %cst_61 = arith.constant 3.200000e+01 : f32
    %182 = vector.broadcast %cst_61 : f32 to vector<16x1xf32>
    %183 = arith.divf %181, %182 : vector<16x1xf32>
    %184 = vector.broadcast %183 : vector<16x1xf32> to vector<16x32xf32>
    %185 = arith.subf %179, %184 : vector<16x32xf32>
    %186 = arith.mulf %185, %185 : vector<16x32xf32>
    %cst_62 = arith.constant dense<0.000000e+00> : vector<16xf32>
    %187 = vector.multi_reduction <add>, %186, %cst_62 [1] : vector<16x32xf32> to vector<16xf32>
    %188 = vector.shape_cast %187 : vector<16xf32> to vector<16x1xf32>
    %cst_63 = arith.constant 3.200000e+01 : f32
    %189 = vector.broadcast %cst_63 : f32 to vector<16x1xf32>
    %190 = arith.divf %188, %189 : vector<16x1xf32>
    %191 = vector.broadcast %183 : vector<16x1xf32> to vector<16x32xf32>
    %192 = arith.subf %179, %191 : vector<16x32xf32>
    %cst_64 = arith.constant 9.99999974E-6 : f32
    %193 = vector.broadcast %cst_64 : f32 to vector<16x1xf32>
    %194 = arith.addf %190, %193 : vector<16x1xf32>
    %195 = math.rsqrt %194 : vector<16x1xf32>
    %196 = vector.broadcast %195 : vector<16x1xf32> to vector<16x32xf32>
    %197 = arith.mulf %192, %196 : vector<16x32xf32>
    %198 = vector.broadcast %6 : vector<1x32xf32> to vector<16x32xf32>
    %199 = arith.mulf %197, %198 : vector<16x32xf32>
    %200 = vector.broadcast %12 : vector<1x32xf32> to vector<16x32xf32>
    %201 = arith.addf %199, %200 : vector<16x32xf32>
    %202 = arith.truncf %201 : vector<16x32xf32> to vector<16x32xbf16>
    %c0_65 = arith.constant 0 : index
    %c0_66 = arith.constant 0 : index
    %203 = vector.load %arg14[%c0_65, %c0_66] : memref<32x64xbf16, #tpu.memory_space<vmem>>, vector<32x64xbf16>
    %cst_67 = arith.constant dense<0.000000e+00> : vector<16x64xf32>
    %204 = tpu.matmul %202, %203, %cst_67 {dimension_numbers = #tpu.dot_dimension_numbers<[1], [0], [0], [1], [0, 0, 1, 1], [], []>} : vector<16x32xbf16>, vector<32x64xbf16>, vector<16x64xf32> -> vector<16x64xf32>
    %c0_68 = arith.constant 0 : index
    %c0_69 = arith.constant 0 : index
    %205 = vector.load %arg15[%c0_68, %c0_69] : memref<1x64xf32, #tpu.memory_space<vmem>>, vector<1x64xf32>
    %206 = vector.broadcast %205 : vector<1x64xf32> to vector<16x64xf32>
    %207 = arith.addf %204, %206 : vector<16x64xf32>
    %cst_70 = arith.constant 0.000000e+00 : f32
    %208 = vector.broadcast %cst_70 : f32 to vector<16x64xf32>
    %209 = arith.maximumf %207, %208 : vector<16x64xf32>
    %210 = arith.truncf %209 : vector<16x64xf32> to vector<16x64xbf16>
    %c0_71 = arith.constant 0 : index
    %c0_72 = arith.constant 0 : index
    %211 = vector.load %arg16[%c0_71, %c0_72] : memref<64x32xbf16, #tpu.memory_space<vmem>>, vector<64x32xbf16>
    %cst_73 = arith.constant dense<0.000000e+00> : vector<16x32xf32>
    %212 = tpu.matmul %210, %211, %cst_73 {dimension_numbers = #tpu.dot_dimension_numbers<[1], [0], [0], [1], [0, 0, 1, 1], [], []>} : vector<16x64xbf16>, vector<64x32xbf16>, vector<16x32xf32> -> vector<16x32xf32>
    %c0_74 = arith.constant 0 : index
    %c0_75 = arith.constant 0 : index
    %213 = vector.load %arg17[%c0_74, %c0_75] : memref<1x32xf32, #tpu.memory_space<vmem>>, vector<1x32xf32>
    %214 = vector.broadcast %213 : vector<1x32xf32> to vector<16x32xf32>
    %215 = arith.addf %212, %214 : vector<16x32xf32>
    %216 = arith.addf %201, %215 : vector<16x32xf32>
    %cst_76 = arith.constant dense<0.000000e+00> : vector<16xf32>
    %217 = vector.multi_reduction <add>, %216, %cst_76 [1] : vector<16x32xf32> to vector<16xf32>
    %218 = vector.shape_cast %217 : vector<16xf32> to vector<16x1xf32>
    %cst_77 = arith.constant 3.200000e+01 : f32
    %219 = vector.broadcast %cst_77 : f32 to vector<16x1xf32>
    %220 = arith.divf %218, %219 : vector<16x1xf32>
    %221 = vector.broadcast %220 : vector<16x1xf32> to vector<16x32xf32>
    %222 = arith.subf %216, %221 : vector<16x32xf32>
    %223 = arith.mulf %222, %222 : vector<16x32xf32>
    %cst_78 = arith.constant dense<0.000000e+00> : vector<16xf32>
    %224 = vector.multi_reduction <add>, %223, %cst_78 [1] : vector<16x32xf32> to vector<16xf32>
    %225 = vector.shape_cast %224 : vector<16xf32> to vector<16x1xf32>
    %cst_79 = arith.constant 3.200000e+01 : f32
    %226 = vector.broadcast %cst_79 : f32 to vector<16x1xf32>
    %227 = arith.divf %225, %226 : vector<16x1xf32>
    %228 = vector.broadcast %220 : vector<16x1xf32> to vector<16x32xf32>
    %229 = arith.subf %216, %228 : vector<16x32xf32>
    %cst_80 = arith.constant 9.99999974E-6 : f32
    %230 = vector.broadcast %cst_80 : f32 to vector<16x1xf32>
    %231 = arith.addf %227, %230 : vector<16x1xf32>
    %232 = math.rsqrt %231 : vector<16x1xf32>
    %233 = vector.broadcast %232 : vector<16x1xf32> to vector<16x32xf32>
    %234 = arith.mulf %229, %233 : vector<16x32xf32>
    %235 = vector.broadcast %8 : vector<1x32xf32> to vector<16x32xf32>
    %236 = arith.mulf %234, %235 : vector<16x32xf32>
    %237 = vector.broadcast %14 : vector<1x32xf32> to vector<16x32xf32>
    %238 = arith.addf %236, %237 : vector<16x32xf32>
    %c0_81 = arith.constant 0 : index
    %c0_82 = arith.constant 0 : index
    %239 = vector.load %arg20[%c0_81, %c0_82] : memref<16x32xf32, #tpu.memory_space<vmem>>, vector<16x32xf32>
    tpu.vector_store %arg20[%c0_81, %c0_82], %238 {strides = array<i32>} : memref<16x32xf32, #tpu.memory_space<vmem>>, vector<16x32xf32>,
    return
  }
}

</mosaic_0001>

<bundles_post_ra>
// kernel: decoder_block_pallas.1
= control target key start
LH: loop header
LB: loop body
LE: loop exit
PB: predicated region body
PF: predicated region fallthrough
CT: control target
= control target key end

     0   :  { %s2724_s0 = inlined_call_operand.vmem [shape: f32[16,32], index: 0, kind: input, shape index: {}]   ;;  %s2725_s1 = inlined_call_operand.vmem [shape: f32[16,32], index: 1, kind: input, shape index: {}]   ;;  %s2726_s2 = inlined_call_operand.vmem [shape: f32[16,16], index: 2, kind: input, shape index: {}]   ;;  %s2727_s3 = inlined_call_operand.hbm [shape: f32[16,16], index: 3, kind: input, shape index: {}]   ;;  %s2728_s4 = inlined_call_operand.hbm [shape: bf16[32,96], index: 4, kind: input, shape index: {}]   ;;  %s2729_s5 = inlined_call_operand.hbm [shape: f32[1,96], index: 5, kind: input, shape index: {}]   ;;  %s2730_s6 = inlined_call_operand.hbm [shape: bf16[32,32], index: 6, kind: input, shape index: {}]   ;;  %s2731_s7 = inlined_call_operand.hbm [shape: f32[1,32], index: 7, kind: input, shape index: {}]   ;;  %s2732_s8 = inlined_call_operand.hbm [shape: bf16[32,32], index: 8, kind: input, shape index: {}]   ;;  %s2733_s9 = inlined_call_operand.hbm [shape: f32[1,32], index: 9, kind: input, shape index: {}]   ;;  %s2734_s10 = inlined_call_operand.hbm [shape: bf16[32,64], index: 10, kind: input, shape index: {}]   ;;  %s2735_s11 = inlined_call_operand.hbm [shape: f32[1,64], index: 11, kind: input, shape index: {}]   ;;  %s2736_s12 = inlined_call_operand.hbm [shape: bf16[32,32], index: 12, kind: input, shape index: {}]   ;;  %s2737_s13 = inlined_call_operand.hbm [shape: f32[1,32], index: 13, kind: input, shape index: {}]   ;;  %s2738_s14 = inlined_call_operand.hbm [shape: bf16[32,64], index: 14, kind: input, shape index: {}]   ;;  %s2739_s15 = inlined_call_operand.hbm [shape: f32[1,64], index: 15, kind: input, shape index: {}]   ;;  %s2740_s16 = inlined_call_operand.vmem [shape: bf16[64,32], index: 16, kind: input, shape index: {}]   ;;  %s2741_s17 = inlined_call_operand.hbm [shape: f32[1,32], index: 17, kind: input, shape index: {}]   ;;  %s2742_s18 = inlined_call_operand.vmem [shape: f32[3,1,32], index: 18, kind: input, shape index: {}]   ;;  %s2743_s19 = inlined_call_operand.hbm [shape: f32[3,1,32], index: 19, kind: input, shape index: {}]   ;;  %s2744_s20 = inlined_call_operand.hbm [shape: f32[16,32], index: 20, kind: output, shape index: {}]  }
   0x1   :  { %2748 = sst [smem:[#allocation36_spill]] %s2724_s0 }
   0x2   :  { %2749 = sst [smem:[#allocation37_spill]] %s2725_s1 }
   0x3   :  { %2750 = sst [smem:[#allocation38_spill]] %s2726_s2 }
   0x4   :  { %2751 = sst [smem:[#allocation39_spill]] %s2727_s3 }
   0x5   :  { %2752 = sst [smem:[#allocation40_spill]] %s2728_s4 }
   0x6   :  { %25 = vsyncpa [#allocation3], 0 }
   0x7   :  { %26 = vsyncpa [#allocation6], 0 }
   0x8   :  { %27 = vsyncpa [#allocation9], 0 }
   0x9   :  { %28 = vsyncpa [#allocation12], 0 }
   0xa   :  { %29 = vsyncpa [#allocation15], 0 }
   0xb   :  { %30 = vsyncpa [#allocation18], 0 }
   0xc   :  { %31 = vsyncpa [#allocation21], 0 }
   0xd   :  { %32 = vsyncpa [#allocation24], 0  ;;  %s2753_s23 = sld [smem:[#allocation40_spill]] }
  0x13   :  { %s57_s24 = sshll.u32 %s2753_s23, 4  ;;  %s58_s24 = int_to_ptr.hbm [resolvable:$true] %s57_s24 }
  0x14   :  { %33 = vsyncpa [#allocation4], 0  ;;  %s2261_s2 = smov [#allocation5]   ;;  %s81_s27 = sshll.u32 %s2730_s6, 4  ;;  %s82_s27 = int_to_ptr.hbm [resolvable:$true] %s81_s27 }
  0x15   :  { %s59_s25 = sshll.u32 %s2261_s2, 4  ;;  %s2262_s28 = smov 64   ;;  %s60_s25 = int_to_ptr.vmem [resolvable:$true] %s59_s25 }
  0x16   :  { %s2263_s4 = smov 4   ;;  %s2264_s29 = smov [#allocation8]  }
  0x17   :  { %65 = dma.hbm_to_vmem [thread:$0]  %s58_s24, 256, %s60_s25, [#allocation6], %s2262_s28, %s2262_s28, %s2263_s4  }
  0x18   :  { %s83_s30 = sshll.u32 %s2264_s29, 4  ;;  %s105_s1 = sshll.u32 %s2732_s8, 4  ;;  %s84_s30 = int_to_ptr.vmem [resolvable:$true] %s83_s30  ;;  %s106_s1 = int_to_ptr.hbm [resolvable:$true] %s105_s1 }
  0x19   :  { %89 = dma.hbm_to_vmem [thread:$0]  %s82_s27, 256, %s84_s30, [#allocation9], %s2262_s28, %s2262_s28, %s2263_s4  }
  0x1a   :  { %s129_s23 = sshll.u32 %s2734_s10, 4  ;;  %s2265_s2 = smov [#allocation11]   ;;  %s130_s23 = int_to_ptr.hbm [resolvable:$true] %s129_s23 }
  0x1b   :  { %s107_s3 = sshll.u32 %s2265_s2, 4  ;;  %s2266_s24 = smov [#allocation14]   ;;  %s108_s3 = int_to_ptr.vmem [resolvable:$true] %s107_s3 }
  0x1c   :  { %113 = dma.hbm_to_vmem [thread:$0]  %s106_s1, 256, %s108_s3, [#allocation12], %s2262_s28, %s2262_s28, %s2263_s4  }
  0x1d   :  { %s131_s8 = sshll.u32 %s2266_s24, 4  ;;  %s153_s29 = sshll.u32 %s2736_s12, 4  ;;  %s132_s8 = int_to_ptr.vmem [resolvable:$true] %s131_s8  ;;  %s154_s29 = int_to_ptr.hbm [resolvable:$true] %s153_s29 }
  0x1e   :  { %137 = dma.hbm_to_vmem [thread:$0]  %s130_s23, 256, %s132_s8, [#allocation15], %s2262_s28, %s2262_s28, %s2263_s4  }
  0x1f   :  { %s177_s30 = sshll.u32 %s2738_s14, 4  ;;  %s2267_s0 = smov [#allocation17]   ;;  %s178_s30 = int_to_ptr.hbm [resolvable:$true] %s177_s30 }
  0x20   :  { %s155_s21 = sshll.u32 %s2267_s0, 4  ;;  %s2268_s1 = smov [#allocation20]   ;;  %s156_s21 = int_to_ptr.vmem [resolvable:$true] %s155_s21 }
  0x21   :  { %161 = dma.hbm_to_vmem [thread:$0]  %s154_s29, 256, %s156_s21, [#allocation18], %s2262_s28, %s2262_s28, %s2263_s4  }
  0x22   :  { %s179_s12 = sshll.u32 %s2268_s1, 4  ;;  %s204_s2 = sshll.u32 %s2741_s17, 4  ;;  %s180_s12 = int_to_ptr.vmem [resolvable:$true] %s179_s12  ;;  %s205_s2 = int_to_ptr.hbm [resolvable:$true] %s204_s2 }
  0x23   :  { %185 = dma.hbm_to_vmem [thread:$0]  %s178_s30, 256, %s180_s12, [#allocation21], %s2262_s28, %s2262_s28, %s2263_s4  }
  0x24   :  { %s2754_s3 = sld [smem:[#allocation39_spill]]  ;;  %s2269_s8 = smov [#allocation23]  }
  0x25   :  { %s206_s25 = sshll.u32 %s2269_s8, 4  ;;  %s2270_s26 = smov [#allocation2]   ;;  %s207_s25 = int_to_ptr.vmem [resolvable:$true] %s206_s25 }
  0x26   :  { %209 = dma.hbm_to_vmem [thread:$0]  %s205_s2, 16, %s207_s25, [#allocation24]  }
  0x27   :  { %s46_s29 = sshll.u32 %s2270_s26, 4  ;;  %s2271_s10 = smov 128   ;;  %s47_s29 = int_to_ptr.vmem [resolvable:$true] %s46_s29 }
  0x28   :  { %s2272_s17 = smov 8   ;;  %s71_s30 = sshll.u32 %s2729_s5, 4  ;;  %s72_s30 = int_to_ptr.hbm [resolvable:$true] %s71_s30 }
  0x29   :  { %s2273_s0 = smov [#allocation7]   ;;  %s95_s6 = sshll.u32 %s2731_s7, 4  ;;  %s96_s6 = int_to_ptr.hbm [resolvable:$true] %s95_s6 }
  0x2a   :  { %s44_s24 = sshll.u32 %s2754_s3, 4  ;;  %s73_s21 = sshll.u32 %s2273_s0, 4  ;;  %s45_s24 = int_to_ptr.hbm [resolvable:$true] %s44_s24  ;;  %s74_s21 = int_to_ptr.vmem [resolvable:$true] %s73_s21 }
  0x2b   :  { %52 = dma.hbm_to_vmem [thread:$0]  %s45_s24, 256, %s47_s29, [#allocation3], %s2271_s10, %s2271_s10, %s2272_s17  }
  0x2c   :  { %76 = dma.hbm_to_vmem [thread:$0]  %s72_s30, 16, %s74_s21, [#allocation6]  }
  0x2d   :  { %s2274_s22 = smov [#allocation10]   ;;  %s119_s3 = sshll.u32 %s2733_s9, 4  ;;  %s120_s3 = int_to_ptr.hbm [resolvable:$true] %s119_s3 }
  0x2e   :  { %s97_s2 = sshll.u32 %s2274_s22, 4  ;;  %s143_s8 = sshll.u32 %s2735_s11, 4  ;;  %s98_s2 = int_to_ptr.vmem [resolvable:$true] %s97_s2  ;;  %s144_s8 = int_to_ptr.hbm [resolvable:$true] %s143_s8 }
  0x2f   :  { %100 = dma.hbm_to_vmem [thread:$0]  %s96_s6, 16, %s98_s2, [#allocation9]  }
  0x30   :  { %s2275_s25 = smov [#allocation13]   ;;  %s2276_s7 = smov [#allocation16]  }
  0x31   :  { %s121_s26 = sshll.u32 %s2275_s25, 4  ;;  %s145_s29 = sshll.u32 %s2276_s7, 4  ;;  %s122_s26 = int_to_ptr.vmem [resolvable:$true] %s121_s26  ;;  %s146_s29 = int_to_ptr.vmem [resolvable:$true] %s145_s29 }
  0x32   :  { %124 = dma.hbm_to_vmem [thread:$0]  %s120_s3, 16, %s122_s26, [#allocation12]  }
  0x33   :  { %s167_s30 = sshll.u32 %s2737_s13, 4  ;;  %s191_s21 = sshll.u32 %s2739_s15, 4  ;;  %s168_s30 = int_to_ptr.hbm [resolvable:$true] %s167_s30  ;;  %s192_s21 = int_to_ptr.hbm [resolvable:$true] %s191_s21 }
  0x34   :  { %148 = dma.hbm_to_vmem [thread:$0]  %s144_s8, 16, %s146_s29, [#allocation15]  }
  0x35   :  { %s2277_s1 = smov [#allocation19]   ;;  %s2278_s12 = smov [#allocation22]  }
  0x36   :  { %s169_s11 = sshll.u32 %s2277_s1, 4  ;;  %s193_s6 = sshll.u32 %s2278_s12, 4  ;;  %s170_s11 = int_to_ptr.vmem [resolvable:$true] %s169_s11  ;;  %s194_s6 = int_to_ptr.vmem [resolvable:$true] %s193_s6 }
  0x37   :  { %172 = dma.hbm_to_vmem [thread:$0]  %s168_s30, 16, %s170_s11, [#allocation18]  }
  0x38   :  { %s216_s14 = sshll.u32 %s2743_s19, 4  ;;  %s2279_s13 = smov [#allocation25]   ;;  %s217_s14 = int_to_ptr.hbm [resolvable:$true] %s216_s14 }
  0x39   :  { %196 = dma.hbm_to_vmem [thread:$0]  %s192_s21, 16, %s194_s6, [#allocation21]  }
  0x3a   :  { %s218_s23 = sshll.u32 %s2279_s13, 4  ;;  %s2280_s3 = smov 16   ;;  %s219_s23 = int_to_ptr.vmem [resolvable:$true] %s218_s23 }
  0x3b   :  { %s2281_s5 = smov 1  }
  0x3c   :  { %224 = dma.hbm_to_vmem [thread:$0]  %s217_s14, 48, %s219_s23, [#allocation24], %s2280_s3, %s2280_s3, %s2281_s5  }
  0x3d   :  { %2243 = dma.done.wait [#allocation3], 256  }
  0x3e   :  { %2244 = vsyncadd [#allocation3], 4294967040 }
  0x3f   :  { %2245 = dma.done.wait [#allocation6], 272  }
  0x40   :  { %2246 = vsyncadd [#allocation6], 4294967024 }
  0x41   :  { %2247 = dma.done.wait [#allocation9], 272  }
  0x42   :  { %2248 = vsyncadd [#allocation9], 4294967024 }
  0x43   :  { %2249 = dma.done.wait [#allocation12], 272  }
  0x44   :  { %2250 = vsyncadd [#allocation12], 4294967024 }
  0x45   :  { %2251 = dma.done.wait [#allocation15], 272  }
  0x46   :  { %2252 = vsyncadd [#allocation15], 4294967024 }
  0x47   :  { %2253 = dma.done.wait [#allocation18], 272  }
  0x48   :  { %2254 = vsyncadd [#allocation18], 4294967024 }
  0x49   :  { %2255 = dma.done.wait [#allocation21], 272  }
  0x4a   :  { %2256 = vsyncadd [#allocation21], 4294967024 }
  0x4b   :  { %2257 = dma.done.wait [#allocation24], 64  }
  0x4c   :  { %2258 = vsyncadd [#allocation24], 4294967232  ;;  %v1650_v0 = vld [vmem:[#allocation5 + $0x8] sm:$0xff]  ;;  %v1649_v1 = vld [vmem:[#allocation5] sm:$0xff]  ;;  %s2755_s24 = sld [smem:[#allocation36_spill]]  ;;  %vm322_vm0 = vcmask 261120  }
  0x4d   :  { %332 = vmatpush.bf16.msra.mxu0 %v1650_v0  ;;  %v1768_v6 = vld [vmem:[#allocation7] ss:$0 sm:$0xff]  ;;  %s2282_s26 = smov 104   ;;  %s2283_s7 = smov 120   ;;  %vm382_vm1 = vcmask 64512   ;;  %vm484_vm2 = vcmask 130048  }
  0x4e   :  { %s2284_s29 = smov 112   ;;  %s2285_s27 = smov 96   ;;  %vm709_vm3 = vcmask 195584  }
  0x4f   :  { %s2756_s9 = sld [smem:[#allocation38_spill]]  ;;  %s1540_s30 = sshll.u32 %s2744_s20, 4  ;;  %s1541_s30 = int_to_ptr.hbm [resolvable:$true] %s1540_s30 }
  0x50   :  { %s2757_s12 = sld [smem:[#allocation37_spill]] }
  0x51   :  { %333 = vmatpush.bf16.msra.mxu0 %v1649_v1 }
  0x52   :  { %v2465_v2 = vld [vmem:[%s2755_s24] sm:$0xff]  ;;  %v2470_v3 = vld [vmem:[%s2755_s24 + $0x8] sm:$0xff] }
  0x53   :  { %v301_v4 = vpack.c.bf16 %v2470_v3, %v2465_v2 }
  0x55   :  { %1570 = vmatmul.msk.bf16.vlgmr.msra.gmra.mxu0 %vm322_vm0, %v301_v4  ;;  %v360_v48 = vld [vmem:[%s2756_s9] sm:$0xff]  ;;  %v361_v60 = vld [vmem:[%s2756_s9 + $0x8] sm:$0xff] }
  0xd2   :  { %v335_v5 = vpop.f32.mrf.mxu0 }
  0xd3   :  { %v336_v8 = vadd.f32 %v1768_v6, %v335_v5 }
  0xd5   :  { %v367_v12 = vpack.c.bf16 %v336_v8, %v336_v8 }
  0xd7   :  { %v377_v14 = vunpack.c.l.b16 %v367_v12 }
  0xda   :  { %v337_v7 = vpop.f32.mrf.mxu0 }
  0xdb   :  { %v338_v9 = vadd.f32 %v1768_v6, %v337_v7 }
  0xdd   :  { %v1703_v10 = vpack.i.bf16 %v338_v9, %v336_v8  ;;  %v368_v11 = vpack.c.bf16 %v338_v9, %v338_v9 }
  0xdf   :  { %1704 = vrot.lane.b32.xlu1 %v1703_v10, %s2282_s26  ;;  %1694 = vrot.lane.b32.xlu0 %v1703_v10, %s2283_s7  ;;  %v378_v13 = vunpack.c.l.b16 %v368_v11 }
  0xe1   :  { %v2478_v15 = vpack.c.b16 %v378_v13, %v377_v14 }
  0xe7   :  { %1699 = vrot.lane.b32.xlu0 %v1703_v10, %s2284_s29 }
  0xef   :  { %380 = vrot.lane.b32.xlu0 %v2478_v15, %s2285_s27 }
 0x151   :  { %v1695_v16 = vpop.permute.xlu0 %1694  ;;  %v1705_v24 = vpop.permute.xlu1 %1704 }
 0x152   :  { %v1697_v17 = vunpack.i.h.bf16 %v1695_v16  ;;  %v1696_v18 = vunpack.i.l.bf16 %v1695_v16  ;;  %v1707_v28 = vunpack.i.h.bf16 %v1705_v24  ;;  %v1706_v29 = vunpack.i.l.bf16 %v1705_v24 }
 0x154   :  { %v370_v19 = vpack.c.bf16 %v1697_v17, %v1697_v17  ;;  %v369_v20 = vpack.c.bf16 %v1696_v18, %v1696_v18  ;;  %v374_v34 = vpack.c.bf16 %v1707_v28, %v1707_v28  ;;  %v373_v35 = vpack.c.bf16 %v1706_v29, %v1706_v29 }
 0x156   :  { %v406_v21 = vunpack.c.l.b16 %v370_v19  ;;  %v405_v22 = vunpack.c.l.b16 %v369_v20  ;;  %v460_v39 = vunpack.c.l.b16 %v374_v34  ;;  %v459_v40 = vunpack.c.l.b16 %v373_v35 }
 0x158   :  { %v2482_v23 = vpack.c.b16 %v406_v21, %v405_v22  ;;  %v2491_v41 = vpack.c.b16 %v460_v39, %v459_v40 }
 0x159   :  { %v1700_v25 = vpop.permute.xlu0 %1699 }
 0x15a   :  { %v1702_v26 = vunpack.i.h.bf16 %v1700_v25  ;;  %v1701_v27 = vunpack.i.l.bf16 %v1700_v25  ;;  %408 = vrot.lane.b32.xlu1 %v2482_v23, %s2285_s27 }
 0x15c   :  { %v372_v30 = vpack.c.bf16 %v1702_v26, %v1702_v26  ;;  %v371_v31 = vpack.c.bf16 %v1701_v27, %v1701_v27 }
 0x15e   :  { %v433_v32 = vunpack.c.l.b16 %v372_v30  ;;  %v432_v33 = vunpack.c.l.b16 %v371_v31 }
 0x160   :  { %v2486_v36 = vpack.c.b16 %v433_v32, %v432_v33 }
 0x161   :  { %v381_v37 = vpop.permute.xlu0 %380 }
 0x162   :  { %435 = vrot.lane.b32.xlu2 %v2486_v36, %s2285_s27  ;;  %v387_v38 = vsel %vm382_vm1, %v381_v37, 0 }
 0x163   :  { %396 = vmatpush.bf16.xpose.msra.mxu1 %v387_v38 }
 0x16a   :  { %462 = vrot.lane.b32.xlu2 %v2491_v41, %s2285_s27  ;;  %1571 = vmatmul.msk.bf16.vlgmr.msra.gmra.mxu1 %vm382_vm1, %v2478_v15 }
 0x1bc   :  { %v436_v42 = vpop.permute.xlu2 %435 }
 0x1bd   :  { %v441_v43 = vsel %vm382_vm1, %v436_v42, 0 }
 0x1be   :  { %450 = vmatpush.bf16.xpose.msra.mxu3 %v441_v43 }
 0x1c4   :  { %v463_v44 = vpop.permute.xlu2 %462 }
 0x1c5   :  { %1573 = vmatmul.msk.bf16.vlgmr.msra.gmra.mxu3 %vm382_vm1, %v2486_v36  ;;  %v468_v45 = vsel %vm382_vm1, %v463_v44, 0 }
 0x1c6   :  { %477 = vmatpush.bf16.xpose.msrb.mxu0 %v468_v45 }
 0x1cc   :  { %v409_v46 = vpop.permute.xlu1 %408 }
 0x1cd   :  { %1574 = vmatmul.msk.bf16.vlgmr.msrb.gmra.mxu0 %vm382_vm1, %v2491_v41  ;;  %v414_v47 = vsel %vm382_vm1, %v409_v46, 0 }
 0x1ce   :  { %423 = vmatpush.bf16.xpose.msra.mxu2 %v414_v47 }
 0x1d5   :  { %1572 = vmatmul.msk.bf16.vlgmr.msra.gmra.mxu2 %vm382_vm1, %v2482_v23 }
 0x1e7   :  { %v398_v52 = vpop.f32.mrf.mxu1 }
 0x1e8   :  { %v2510_v53 = vadd.f32 %v398_v52, %v360_v48 }
 0x1ea   :  { %v485_v54 = vsel %vm484_vm2, %v2510_v53, -inf }
 0x1ef   :  { %v400_v1 = vpop.f32.mrf.mxu1 }
 0x1f0   :  { %v401_v5 = vadd.f32 %v400_v1, %v361_v60 }
 0x1f2   :  { %v488_v8 = vsel %vm484_vm2, %v401_v5, -inf }
 0x248   :  { %v452_v49 = vpop.f32.mrf.mxu3 }
 0x249   :  { %v453_v50 = vadd.f32 %v452_v49, %v360_v48 }
 0x24a   :  { %v479_v58 = vpop.f32.mrf.mxu0 }
 0x24b   :  { %v497_v51 = vsel %vm484_vm2, %v453_v50, -inf  ;;  %v480_v59 = vadd.f32 %v479_v58, %v360_v48 }
 0x24c   :  { %498 = vmax.xlane.f32.xlu0 %v497_v51 }
 0x24d   :  { %v503_v0 = vsel %vm484_vm2, %v480_v59, -inf }
 0x250   :  { %v454_v4 = vpop.f32.mrf.mxu3 }
 0x251   :  { %v455_v6 = vadd.f32 %v454_v4, %v361_v60 }
 0x252   :  { %v481_v9 = vpop.f32.mrf.mxu0 }
 0x253   :  { %v500_v7 = vsel %vm484_vm2, %v455_v6, -inf  ;;  %v482_v10 = vadd.f32 %v481_v9, %v361_v60 }
 0x254   :  { %486 = vmax.xlane.f32.xlu0 %v485_v54 }
 0x255   :  { %v506_v11 = vsel %vm484_vm2, %v482_v10, -inf }
 0x258   :  { %v425_v55 = vpop.f32.mrf.mxu2 }
 0x259   :  { %v426_v56 = vadd.f32 %v425_v55, %v360_v48 }
 0x25b   :  { %v491_v57 = vsel %vm484_vm2, %v426_v56, -inf }
 0x25c   :  { %492 = vmax.xlane.f32.xlu1 %v491_v57 }
 0x260   :  { %v427_v61 = vpop.f32.mrf.mxu2 }
 0x261   :  { %v428_v62 = vadd.f32 %v427_v61, %v361_v60 }
 0x263   :  { %v494_v63 = vsel %vm484_vm2, %v428_v62, -inf }
 0x264   :  { %495 = vmax.xlane.f32.xlu2 %v494_v63  ;;  %504 = vmax.xlane.f32.xlu1 %v503_v0 }
 0x26c   :  { %501 = vmax.xlane.f32.xlu2 %v500_v7  ;;  %489 = vmax.xlane.f32.xlu1 %v488_v8 }
 0x274   :  { %507 = vmax.xlane.f32.xlu2 %v506_v11 }
 0x2bf   :  { %v499_v12 = vpop.xlane.xlu0 %498 }
 0x2c0   :  { %v513_v13 = vsub.f32 %v453_v50, %v499_v12 }
 0x2c2   :  { %v525_v14 = vmul.f32 1.442695, %v513_v13 }
 0x2c4   :  { %1781 = vpow2.f32 %v525_v14 }
 0x2c7   :  { %v487_v46 = vpop.xlane.xlu0 %486 }
 0x2c8   :  { %v509_v48 = vsub.f32 %v2510_v53, %v487_v46 }
 0x2ca   :  { %v2523_v16 = vpop.eup %1781  ;;  %v517_v50 = vmul.f32 1.442695, %v509_v48 }
 0x2cb   :  { %v545_v17 = vsel %vm484_vm2, %v2523_v16, 0.0 }
 0x2cc   :  { %546 = vadd.xlane.f32.xlu1 %v545_v17 }
 0x2cf   :  { %v493_v18 = vpop.xlane.xlu1 %492 }
 0x2d0   :  { %v511_v19 = vsub.f32 %v426_v56, %v493_v18 }
 0x2d2   :  { %v521_v20 = vmul.f32 1.442695, %v511_v19 }
 0x2d4   :  { %1783 = vpow2.f32 %v521_v20 }
 0x2d7   :  { %v496_v21 = vpop.xlane.xlu2 %495  ;;  %v505_v22 = vpop.xlane.xlu1 %504 }
 0x2d8   :  { %v515_v24 = vsub.f32 %v480_v59, %v505_v22  ;;  %v512_v27 = vsub.f32 %v428_v62, %v496_v21 }
 0x2da   :  { %v1784_v25 = vpop.eup %1783  ;;  %v529_v26 = vmul.f32 1.442695, %v515_v24  ;;  %v523_v29 = vmul.f32 1.442695, %v512_v27 }
 0x2db   :  { %v539_v28 = vsel %vm484_vm2, %v1784_v25, 0.0 }
 0x2dc   :  { %540 = vadd.xlane.f32.xlu2 %v539_v28  ;;  %1785 = vpow2.f32 %v529_v26 }
 0x2dd   :  { %1787 = vpow2.f32 %v523_v29 }
 0x2df   :  { %v502_v30 = vpop.xlane.xlu2 %501  ;;  %v490_v47 = vpop.xlane.xlu1 %489 }
 0x2e0   :  { %v514_v31 = vsub.f32 %v455_v6, %v502_v30  ;;  %v510_v49 = vsub.f32 %v401_v5, %v490_v47 }
 0x2e2   :  { %v527_v32 = vmul.f32 1.442695, %v514_v31  ;;  %v2528_v33 = vpop.eup %1785  ;;  %v519_v51 = vmul.f32 1.442695, %v510_v49 }
 0x2e3   :  { %v551_v34 = vsel %vm484_vm2, %v2528_v33, 0.0  ;;  %v1788_v38 = vpop.eup %1787 }
 0x2e4   :  { %1789 = vpow2.f32 %v527_v32  ;;  %552 = vadd.xlane.f32.xlu0 %v551_v34  ;;  %v542_v43 = vsel %vm484_vm2, %v1788_v38, 0.0 }
 0x2e7   :  { %v508_v35 = vpop.xlane.xlu2 %507 }
 0x2e8   :  { %v516_v37 = vsub.f32 %v482_v10, %v508_v35 }
 0x2ea   :  { %v1790_v39 = vpop.eup %1789  ;;  %v531_v40 = vmul.f32 1.442695, %v516_v37 }
 0x2eb   :  { %v548_v42 = vsel %vm484_vm2, %v1790_v39, 0.0 }
 0x2ec   :  { %1791 = vpow2.f32 %v531_v40  ;;  %549 = vadd.xlane.f32.xlu2 %v548_v42  ;;  %543 = vadd.xlane.f32.xlu0 %v542_v43 }
 0x2ed   :  { %1793 = vpow2.f32 %v517_v50 }
 0x2ee   :  { %1795 = vpow2.f32 %v519_v51  ;;  %v1652_v51 = vld [vmem:[#allocation8 + $0x8] sm:$0xff] }
 0x2f2   :  { %v1792_v44 = vpop.eup %1791 }
 0x2f3   :  { %v554_v45 = vsel %vm484_vm2, %v1792_v44, 0.0  ;;  %v1794_v52 = vpop.eup %1793 }
 0x2f4   :  { %555 = vadd.xlane.f32.xlu1 %v554_v45 }
 0x300   :  { %636 = vrot.lane.b32.xlu0 %v2486_v36, %s2262_s28  ;;  %v2544_v36 = vpop.eup %1795 }
 0x304   :  { %611 = vrot.lane.b32.xlu2 %v2482_v23, %s2262_s28  ;;  %v533_v23 = vsel %vm484_vm2, %v1794_v52, 0.0 }
 0x30d   :  { %661 = vrot.lane.b32.xlu1 %v2491_v41, %s2262_s28  ;;  %v536_v41 = vsel %vm484_vm2, %v2544_v36, 0.0 }
 0x315   :  { %586 = vrot.lane.b32.xlu1 %v2478_v15, %s2262_s28  ;;  %s2286_s28 = smov 24  }
 0x32a   :  { %534 = vadd.xlane.f32.xlu0 %v533_v23 }
 0x32d   :  { %537 = vadd.xlane.f32.xlu2 %v536_v41 }
 0x33f   :  { %v547_v55 = vpop.xlane.xlu1 %546 }
 0x34f   :  { %v541_v15 = vpop.xlane.xlu2 %540 }
 0x350   :  { %1797 = vrcp.f32 %v541_v15 }
 0x356   :  { %v1798_v57 = vpop.eup %1797 }
 0x357   :  { %v553_v54 = vpop.xlane.xlu0 %552  ;;  %v567_v58 = vmul.f32 %v1798_v57, %v1784_v25 }
 0x359   :  { %v575_v63 = vpack.c.bf16 %v567_v58, %v567_v58 }
 0x35b   :  { %v608_v7 = vunpack.c.l.b16 %v575_v63 }
 0x35f   :  { %v550_v53 = vpop.xlane.xlu2 %549  ;;  %v544_v56 = vpop.xlane.xlu0 %543 }
 0x360   :  { %1799 = vrcp.f32 %v550_v53 }
 0x361   :  { %1801 = vrcp.f32 %v544_v56 }
 0x362   :  { %1803 = vrcp.f32 %v547_v55 }
 0x366   :  { %v1800_v59 = vpop.eup %1799 }
 0x367   :  { %v1802_v60 = vpop.eup %1801  ;;  %v612_v61 = vpop.permute.xlu2 %611  ;;  %v570_v1 = vmul.f32 %v1800_v59, %v1790_v39 }
 0x368   :  { %v1804_v62 = vpop.eup %1803  ;;  %v568_v0 = vmul.f32 %v1802_v60, %v1788_v38  ;;  %624 = vmatpush.bf16.msrb.mxu2 %v612_v61  ;;  %v556_v4 = vpop.xlane.xlu1 %555 }
 0x369   :  { %v569_v6 = vmul.f32 %v1804_v62, %v2523_v16  ;;  %1805 = vrcp.f32 %v556_v4  ;;  %v578_v9 = vpack.c.bf16 %v570_v1, %v570_v1 }
 0x36a   :  { %v576_v5 = vpack.c.bf16 %v568_v0, %v568_v0  ;;  %1807 = vrcp.f32 %v553_v54 }
 0x36b   :  { %v577_v11 = vpack.c.bf16 %v569_v6, %v569_v6  ;;  %v634_v12 = vunpack.c.l.b16 %v578_v9 }
 0x36c   :  { %v609_v8 = vunpack.c.l.b16 %v576_v5  ;;  %v1769_v5 = vld [vmem:[#allocation10] ss:$0 sm:$0xff] }
 0x36d   :  { %v633_v14 = vunpack.c.l.b16 %v577_v11 }
 0x36e   :  { %v610_v10 = vpack.c.b16 %v609_v8, %v608_v7 }
 0x36f   :  { %v1806_v13 = vpop.eup %1805  ;;  %v635_v20 = vpack.c.b16 %v634_v12, %v633_v14  ;;  %v2287_v14 = vmov 32.0  }
 0x370   :  { %1576 = vmatmul.msk.bf16.vlgmr.msrb.gmra.mxu2 %vm484_vm2, %v610_v10  ;;  %v1808_v18 = vpop.eup %1807  ;;  %v572_v19 = vmul.f32 %v1806_v13, %v1792_v44 }
 0x371   :  { %v571_v21 = vmul.f32 %v1808_v18, %v2528_v33 }
 0x372   :  { %v637_v17 = vpop.permute.xlu0 %636  ;;  %v580_v16 = vpack.c.bf16 %v572_v19, %v572_v19 }
 0x373   :  { %649 = vmatpush.bf16.msrb.mxu3 %v637_v17  ;;  %v579_v22 = vpack.c.bf16 %v571_v21, %v571_v21 }
 0x374   :  { %v659_v24 = vunpack.c.l.b16 %v580_v16 }
 0x375   :  { %v658_v25 = vunpack.c.l.b16 %v579_v22 }
 0x376   :  { %1577 = vmatmul.msk.bf16.vlgmr.msrb.gmra.mxu3 %vm484_vm2, %v635_v20 }
 0x377   :  { %v660_v27 = vpack.c.b16 %v659_v24, %v658_v25 }
 0x37f   :  { %v662_v26 = vpop.permute.xlu1 %661 }
 0x380   :  { %674 = vmatpush.bf16.msra.mxu0 %v662_v26 }
 0x383   :  { %1578 = vmatmul.msk.bf16.vlgmr.msra.gmra.mxu0 %vm484_vm2, %v660_v27 }
 0x387   :  { %v587_v28 = vpop.permute.xlu1 %586 }
 0x388   :  { %599 = vmatpush.bf16.msrb.mxu1 %v587_v28 }
 0x38c   :  { %737 = vmatpush.bf16.msra.mxu1 %v1652_v51 }
 0x39d   :  { %v535_v29 = vpop.xlane.xlu0 %534 }
 0x39e   :  { %1809 = vrcp.f32 %v535_v29 }
 0x3a0   :  { %v538_v30 = vpop.xlane.xlu2 %537 }
 0x3a1   :  { %1811 = vrcp.f32 %v538_v30 }
 0x3a2   :  { %1813 = vrcp.f32 %v2287_v14 }
 0x3a4   :  { %v1810_v31 = vpop.eup %1809 }
 0x3a5   :  { %v565_v32 = vmul.f32 %v1810_v31, %v1794_v52  ;;  %v1651_v52 = vld [vmem:[#allocation8] sm:$0xff]  ;;  %v1656_v31 = vld [vmem:[#allocation14 + $0x8] sm:$0xff] }
 0x3a6   :  { %738 = vmatpush.bf16.msra.mxu1 %v1651_v52  ;;  %875 = vmatpush.bf16.msra.mxu3 %v1656_v31 }
 0x3a7   :  { %v1812_v33 = vpop.eup %1811  ;;  %v573_v34 = vpack.c.bf16 %v565_v32, %v565_v32  ;;  %v1655_v32 = vld [vmem:[#allocation14] sm:$0xff] }
 0x3a8   :  { %v566_v35 = vmul.f32 %v1812_v33, %v2544_v36  ;;  %v1814_v17 = vpop.eup %1813  ;;  %v288_v33 = vld [vmem:[%s2757_s12] sm:$0xff] }
 0x3a9   :  { %v583_v38 = vunpack.c.l.b16 %v573_v34  ;;  %v754_v18 = vmul.f32 32.0, %v1814_v17  ;;  %vm758_vm4 = vweird.f32 %v1814_v17  ;;  %v289_v34 = vld [vmem:[%s2757_s12 + $0x8] sm:$0xff] }
 0x3aa   :  { %v574_v37 = vpack.c.bf16 %v566_v35, %v566_v35  ;;  %876 = vmatpush.bf16.msra.mxu3 %v1655_v32  ;;  %v290_v35 = vpack.c.bf16 %v289_v34, %v288_v33 }
 0x3ab   :  { %v755_v19 = vsub.f32 1.0, %v754_v18  ;;  %v1773_v18 = vld [vmem:[#allocation13] ss:$0 sm:$0xff] }
 0x3ac   :  { %v584_v39 = vunpack.c.l.b16 %v574_v37  ;;  %v1654_v37 = vld [vmem:[#allocation11 + $0x8] sm:$0xff] }
 0x3ad   :  { %v756_v20 = vmul.f32 %v1814_v17, %v755_v19  ;;  %1605 = vmatmul.msk.bf16.vlgmr.msra.gmra.mxu3 %vm322_vm0, %v290_v35  ;;  %838 = vmatpush.bf16.msra.mxu2 %v1654_v37 }
 0x3ae   :  { %v585_v40 = vpack.c.b16 %v584_v39, %v583_v38 }
 0x3af   :  { %v757_v21 = vadd.f32 %v1814_v17, %v756_v20 }
 0x3b0   :  { %1575 = vmatmul.msk.bf16.vlgmr.msrb.gmra.mxu1 %vm484_vm2, %v585_v40  ;;  %v1653_v40 = vld [vmem:[#allocation11] sm:$0xff] }
 0x3b1   :  { %v2570_v16 = vsel %vm758_vm4, %v1814_v17, %v757_v21  ;;  %839 = vmatpush.bf16.msra.mxu2 %v1653_v40 }
 0x3f3   :  { %v626_v42 = vpop.f32.mrf.mxu2 }
 0x3f9   :  { %v651_v43 = vpop.f32.mrf.mxu3 }
 0x3fb   :  { %v628_v44 = vpop.f32.mrf.mxu2 }
 0x3fc   :  { %v1708_v45 = vpack.i.bf16 %v628_v44, %v626_v42 }
 0x3fe   :  { %1709 = vrot.lane.b32.xlu1 %v1708_v45, %s2272_s17 }
 0x400   :  { %v676_v46 = vpop.f32.mrf.mxu0 }
 0x401   :  { %v653_v47 = vpop.f32.mrf.mxu3 }
 0x402   :  { %v1713_v48 = vpack.i.bf16 %v653_v47, %v651_v43 }
 0x406   :  { %1714 = vrot.lane.b32.xlu1 %v1713_v48, %s2280_s3 }
 0x408   :  { %v678_v49 = vpop.f32.mrf.mxu0 }
 0x409   :  { %v1718_v50 = vpack.i.bf16 %v678_v49, %v676_v46 }
 0x40e   :  { %1719 = vrot.lane.b32.xlu1 %v1718_v50, %s2286_s28 }
 0x42d   :  { %v601_v23 = vpop.f32.mrf.mxu1 }
 0x435   :  { %v603_v56 = vpop.f32.mrf.mxu1 }
 0x470   :  { %v1710_v36 = vpop.permute.xlu1 %1709 }
 0x471   :  { %v1712_v15 = vunpack.i.h.bf16 %v1710_v36  ;;  %v1711_v54 = vunpack.i.l.bf16 %v1710_v36 }
 0x473   :  { %v705_v58 = vsel %vm382_vm1, %v601_v23, %v1711_v54  ;;  %v706_v59 = vsel %vm382_vm1, %v603_v56, %v1712_v15 }
 0x478   :  { %v1715_v41 = vpop.permute.xlu1 %1714 }
 0x479   :  { %v1717_v55 = vunpack.i.h.bf16 %v1715_v41  ;;  %v1716_v53 = vunpack.i.l.bf16 %v1715_v41 }
 0x47b   :  { %v707_v62 = vsel %vm484_vm2, %v705_v58, %v1716_v53  ;;  %v708_v63 = vsel %vm484_vm2, %v706_v59, %v1717_v55  ;;  %v1770_v55 = vld [vmem:[%s2742_s18] ss:$0 sm:$0xff]  ;;  %v1771_v58 = vld [vmem:[#allocation25] ss:$0 sm:$0xff] }
 0x480   :  { %v1720_v57 = vpop.permute.xlu1 %1719 }
 0x481   :  { %v1722_v60 = vunpack.i.h.bf16 %v1720_v57  ;;  %v1721_v61 = vunpack.i.l.bf16 %v1720_v57 }
 0x483   :  { %v710_v0 = vsel %vm709_vm3, %v707_v62, %v1721_v61  ;;  %v711_v1 = vsel %vm709_vm3, %v708_v63, %v1722_v60 }
 0x484   :  { %v712_v4 = vpack.c.bf16 %v711_v1, %v710_v0  ;;  %v878_v1 = vpop.f32.mrf.mxu3 }
 0x486   :  { %1587 = vmatmul.msk.bf16.vlgmr.msra.gmra.mxu1 %vm322_vm0, %v712_v4  ;;  %v1772_v4 = vld [vmem:[#allocation16] ss:$0 sm:$0xff] }
 0x503   :  { %v740_v6 = vpop.f32.mrf.mxu1 }
 0x504   :  { %v741_v7 = vadd.f32 %v1769_v5, %v740_v6  ;;  %v880_v6 = vpop.f32.mrf.mxu3 }
 0x506   :  { %v745_v8 = vadd.f32 %v741_v7, %v2465_v2  ;;  %v881_v7 = vadd.f32 %v1772_v4, %v880_v6 }
 0x508   :  { %v747_v9 = vsel %vm322_vm0, %v745_v8, 0.0 }
 0x509   :  { %748 = vadd.xlane.f32.xlu1 %v747_v9 }
 0x50b   :  { %v742_v10 = vpop.f32.mrf.mxu1 }
 0x50c   :  { %v743_v11 = vadd.f32 %v1769_v5, %v742_v10  ;;  %v879_v5 = vadd.f32 %v1772_v4, %v878_v1  ;;  %v939_v10 = vpack.c.bf16 %v881_v7, %v881_v7 }
 0x50e   :  { %v746_v12 = vadd.f32 %v743_v11, %v2470_v3  ;;  %v938_v9 = vpack.c.bf16 %v879_v5, %v879_v5 }
 0x510   :  { %v750_v13 = vsel %vm322_vm0, %v746_v12, 0.0  ;;  %v953_v11 = vunpack.c.l.b16 %v938_v9 }
 0x511   :  { %751 = vadd.xlane.f32.xlu0 %v750_v13 }
 0x57c   :  { %v749_v2 = vpop.xlane.xlu1 %748 }
 0x57d   :  { %v760_v22 = vmul.f32 %v2570_v16, %v749_v2 }
 0x57f   :  { %v762_v24 = vsub.f32 %v745_v8, %v760_v22  ;;  %v1743_v8 = vpack.i.bf16 %v881_v7, %v879_v5 }
 0x581   :  { %v764_v25 = vmul.f32 %v762_v24, %v762_v24  ;;  %1744 = vrot.lane.b32.xlu1 %v1743_v8, %s2283_s7 }
 0x583   :  { %v766_v3 = vsel %vm322_vm0, %v764_v25, 0.0 }
 0x584   :  { %v752_v26 = vpop.xlane.xlu0 %751  ;;  %767 = vadd.xlane.f32.xlu2 %v766_v3 }
 0x585   :  { %v761_v27 = vmul.f32 %v2570_v16, %v752_v26 }
 0x587   :  { %v763_v28 = vsub.f32 %v746_v12, %v761_v27  ;;  %v954_v12 = vunpack.c.l.b16 %v939_v10 }
 0x589   :  { %v765_v29 = vmul.f32 %v763_v28, %v763_v28  ;;  %v2598_v13 = vpack.c.b16 %v954_v12, %v953_v11 }
 0x58b   :  { %v769_v30 = vsel %vm322_vm0, %v765_v29, 0.0  ;;  %v960_v14 = vsel %vm382_vm1, %v2598_v13, 0 }
 0x58c   :  { %770 = vadd.xlane.f32.xlu0 %v769_v30  ;;  %969 = vmatpush.bf16.xpose.msrb.mxu0 %v960_v14 }
 0x59c   :  { %1724 = vrot.lane.b32.xlu2 %v1743_v8, %s2284_s29 }
 0x5a0   :  { %1729 = vrot.lane.b32.xlu0 %v1743_v8, %s2282_s26 }
 0x5f3   :  { %v1745_v37 = vpop.permute.xlu1 %1744 }
 0x5f7   :  { %v768_v38 = vpop.xlane.xlu2 %767 }
 0x5f8   :  { %v772_v39 = vmul.f32 %v768_v38, %v2570_v16  ;;  %v1747_v38 = vunpack.i.h.bf16 %v1745_v37 }
 0x5fa   :  { %v774_v42 = vadd.f32 1e-05, %v772_v39  ;;  %v1746_v39 = vunpack.i.l.bf16 %v1745_v37  ;;  %v941_v40 = vpack.c.bf16 %v1747_v38, %v1747_v38 }
 0x5fc   :  { %1815 = vrsqrt.f32 %v774_v42  ;;  %vm782_vm6 = vweird.f32 %v774_v42 }
 0x5ff   :  { %v771_v43 = vpop.xlane.xlu0 %770  ;;  %v1725_v27 = vpop.permute.xlu2 %1724 }
 0x600   :  { %v773_v44 = vmul.f32 %v771_v43, %v2570_v16  ;;  %v1726_v29 = vunpack.i.l.bf16 %v1725_v27  ;;  %v984_v43 = vunpack.c.l.b16 %v941_v40 }
 0x602   :  { %v1816_v45 = vpop.eup %1815  ;;  %v775_v46 = vadd.f32 1e-05, %v773_v44  ;;  %v942_v31 = vpack.c.bf16 %v1726_v29, %v1726_v29 }
 0x603   :  { %v777_v47 = vmul.f32 %v1816_v45, %v774_v42  ;;  %vm783_vm5 = vweird.f32 %v1816_v45  ;;  %v940_v42 = vpack.c.bf16 %v1746_v39, %v1746_v39 }
 0x604   :  { %1817 = vrsqrt.f32 %v775_v46  ;;  %vm784_vm7 = vmor %vm782_vm6, %vm783_vm5  ;;  %vm792_vm9 = vweird.f32 %v775_v46  ;;  %v1013_v33 = vunpack.c.l.b16 %v942_v31 }
 0x605   :  { %v778_v48 = vmul.f32 %v1816_v45, %v777_v47  ;;  %v983_v44 = vunpack.c.l.b16 %v940_v42 }
 0x607   :  { %v779_v49 = vmul.f32 0.5, %v778_v48 }
 0x609   :  { %v780_v50 = vsub.f32 1.5, %v779_v49 }
 0x60a   :  { %v1818_v51 = vpop.eup %1817 }
 0x60b   :  { %v781_v52 = vmul.f32 %v1816_v45, %v780_v50  ;;  %v787_v36 = vmul.f32 %v1818_v51, %v775_v46  ;;  %vm793_vm8 = vweird.f32 %v1818_v51 }
 0x60c   :  { %vm794_vm10 = vmor %vm792_vm9, %vm793_vm8 }
 0x60d   :  { %v788_v23 = vmul.f32 %v1818_v51, %v787_v36  ;;  %v785_v41 = vsel %vm784_vm7, %v1816_v45, %v781_v52  ;;  %v2610_v45 = vpack.c.b16 %v984_v43, %v983_v44 }
 0x60e   :  { %v796_v53 = vmul.f32 %v785_v41, %v762_v24 }
 0x60f   :  { %v789_v15 = vmul.f32 0.5, %v788_v23  ;;  %v990_v49 = vsel %vm382_vm1, %v2610_v45, 0 }
 0x610   :  { %v801_v59 = vmul.f32 %v1770_v55, %v796_v53  ;;  %999 = vmatpush.bf16.xpose.msrb.mxu1 %v990_v49 }
 0x611   :  { %v790_v54 = vsub.f32 1.5, %v789_v15 }
 0x612   :  { %v2588_v62 = vadd.f32 %v1771_v58, %v801_v59  ;;  %v1730_v46 = vpop.permute.xlu0 %1729 }
 0x613   :  { %v791_v56 = vmul.f32 %v1818_v51, %v790_v54  ;;  %v1732_v47 = vunpack.i.h.bf16 %v1730_v46  ;;  %v1731_v48 = vunpack.i.l.bf16 %v1730_v46 }
 0x615   :  { %v795_v57 = vsel %vm794_vm10, %v1818_v51, %v791_v56  ;;  %v945_v50 = vpack.c.bf16 %v1732_v47, %v1732_v47  ;;  %v944_v51 = vpack.c.bf16 %v1731_v48, %v1731_v48 }
 0x616   :  { %v797_v60 = vmul.f32 %v795_v57, %v763_v28  ;;  %v1727_v28 = vunpack.i.h.bf16 %v1725_v27 }
 0x617   :  { %v1044_v52 = vunpack.c.l.b16 %v945_v50  ;;  %v1043_v36 = vunpack.c.l.b16 %v944_v51 }
 0x618   :  { %v802_v61 = vmul.f32 %v1770_v55, %v797_v60  ;;  %v943_v30 = vpack.c.bf16 %v1727_v28, %v1727_v28 }
 0x619   :  { %v2614_v23 = vpack.c.b16 %v1044_v52, %v1043_v36 }
 0x61a   :  { %v2590_v63 = vadd.f32 %v1771_v58, %v802_v61  ;;  %v1014_v32 = vunpack.c.l.b16 %v943_v30 }
 0x61b   :  { %v1050_v41 = vsel %vm382_vm1, %v2614_v23, 0 }
 0x61c   :  { %v808_v0 = vpack.c.bf16 %v2590_v63, %v2588_v62  ;;  %v2606_v34 = vpack.c.b16 %v1014_v32, %v1013_v33  ;;  %1059 = vmatpush.bf16.xpose.msrb.mxu3 %v1050_v41 }
 0x61e   :  { %1596 = vmatmul.msk.bf16.vlgmr.msra.gmra.mxu2 %vm322_vm0, %v808_v0  ;;  %v1020_v35 = vsel %vm382_vm1, %v2606_v34, 0 }
 0x61f   :  { %1029 = vmatpush.bf16.xpose.msrb.mxu2 %v1020_v35 }
 0x6a1   :  { %v841_v17 = vpop.f32.mrf.mxu2 }
 0x6a2   :  { %v842_v19 = vadd.f32 %v1773_v18, %v841_v17 }
 0x6a4   :  { %v930_v21 = vpack.c.bf16 %v842_v19, %v842_v19 }
 0x6a6   :  { %v948_v25 = vunpack.c.l.b16 %v930_v21 }
 0x6a9   :  { %v843_v20 = vpop.f32.mrf.mxu2 }
 0x6aa   :  { %v844_v2 = vadd.f32 %v1773_v18, %v843_v20 }
 0x6ac   :  { %v931_v22 = vpack.c.bf16 %v844_v2, %v844_v2  ;;  %v1738_v24 = vpack.i.bf16 %v844_v2, %v842_v19  ;;  %v923_v19 = vld [vmem:[#allocation2] sm:$0xff] }
 0x6ae   :  { %v949_v3 = vunpack.c.l.b16 %v931_v22  ;;  %1739 = vrot.lane.b32.xlu0 %v1738_v24, %s2282_s26  ;;  %1734 = vrot.lane.b32.xlu2 %v1738_v24, %s2284_s29  ;;  %v924_v22 = vld [vmem:[#allocation2 + $0x8] sm:$0xff]  ;;  %s2288_s29 = smov [#allocation26]  }
 0x6b0   :  { %v950_v26 = vpack.c.b16 %v949_v3, %v948_v25 }
 0x6b2   :  { %1606 = vmatmul.msk.bf16.vlgmr.msrb.gmra.mxu0 %vm382_vm1, %v950_v26 }
 0x6b6   :  { %1749 = vrot.lane.b32.xlu2 %v1738_v24, %s2283_s7 }
 0x708   :  { %v1735_v15 = vpop.permute.xlu2 %1734 }
 0x709   :  { %v1737_v54 = vunpack.i.h.bf16 %v1735_v15  ;;  %v1736_v55 = vunpack.i.l.bf16 %v1735_v15 }
 0x70b   :  { %v935_v53 = vpack.c.bf16 %v1737_v54, %v1737_v54  ;;  %v934_v56 = vpack.c.bf16 %v1736_v55, %v1736_v55 }
 0x70d   :  { %v1009_v57 = vunpack.c.l.b16 %v935_v53  ;;  %v1008_v58 = vunpack.c.l.b16 %v934_v56 }
 0x70f   :  { %v1010_v59 = vpack.c.b16 %v1009_v57, %v1008_v58 }
 0x710   :  { %v1750_v60 = vpop.permute.xlu2 %1749 }
 0x711   :  { %v1752_v61 = vunpack.i.h.bf16 %v1750_v60  ;;  %v1751_v0 = vunpack.i.l.bf16 %v1750_v60  ;;  %1608 = vmatmul.msk.bf16.vlgmr.msrb.gmra.mxu2 %vm382_vm1, %v1010_v59 }
 0x713   :  { %v933_v1 = vpack.c.bf16 %v1752_v61, %v1752_v61  ;;  %v932_v4 = vpack.c.bf16 %v1751_v0, %v1751_v0 }
 0x715   :  { %v979_v5 = vunpack.c.l.b16 %v933_v1  ;;  %v978_v6 = vunpack.c.l.b16 %v932_v4 }
 0x717   :  { %v980_v7 = vpack.c.b16 %v979_v5, %v978_v6 }
 0x719   :  { %1607 = vmatmul.msk.bf16.vlgmr.msrb.gmra.mxu1 %vm382_vm1, %v980_v7 }
 0x720   :  { %v1740_v8 = vpop.permute.xlu0 %1739 }
 0x721   :  { %v1742_v9 = vunpack.i.h.bf16 %v1740_v8  ;;  %v1741_v10 = vunpack.i.l.bf16 %v1740_v8 }
 0x723   :  { %v937_v11 = vpack.c.bf16 %v1742_v9, %v1742_v9  ;;  %v936_v12 = vpack.c.bf16 %v1741_v10, %v1741_v10 }
 0x725   :  { %v1039_v14 = vunpack.c.l.b16 %v937_v11  ;;  %v1038_v17 = vunpack.c.l.b16 %v936_v12 }
 0x727   :  { %v1040_v18 = vpack.c.b16 %v1039_v14, %v1038_v17 }
 0x729   :  { %1609 = vmatmul.msk.bf16.vlgmr.msrb.gmra.mxu3 %vm382_vm1, %v1040_v18 }
 0x72f   :  { %v971_v29 = vpop.f32.mrf.mxu0 }
 0x730   :  { %v2624_v30 = vadd.f32 %v971_v29, %v923_v19 }
 0x732   :  { %v1066_v35 = vsel %vm484_vm2, %v2624_v30, -inf }
 0x737   :  { %v973_v44 = vpop.f32.mrf.mxu0 }
 0x738   :  { %v974_v46 = vadd.f32 %v973_v44, %v924_v22 }
 0x73a   :  { %v1069_v47 = vsel %vm484_vm2, %v974_v46, -inf }
 0x794   :  { %v1031_v20 = vpop.f32.mrf.mxu2 }
 0x795   :  { %v1032_v21 = vadd.f32 %v1031_v20, %v923_v19 }
 0x796   :  { %v1001_v26 = vpop.f32.mrf.mxu1 }
 0x797   :  { %v1078_v2 = vsel %vm484_vm2, %v1032_v21, -inf  ;;  %v1002_v27 = vadd.f32 %v1001_v26, %v923_v19 }
 0x798   :  { %1079 = vmax.xlane.f32.xlu0 %v1078_v2 }
 0x799   :  { %v1072_v28 = vsel %vm484_vm2, %v1002_v27, -inf }
 0x79c   :  { %v1033_v24 = vpop.f32.mrf.mxu2 }
 0x79d   :  { %v1034_v25 = vadd.f32 %v1033_v24, %v924_v22 }
 0x79e   :  { %v1003_v40 = vpop.f32.mrf.mxu1 }
 0x79f   :  { %v1081_v3 = vsel %vm484_vm2, %v1034_v25, -inf  ;;  %v1004_v42 = vadd.f32 %v1003_v40, %v924_v22 }
 0x7a0   :  { %1082 = vmax.xlane.f32.xlu2 %v1081_v3 }
 0x7a1   :  { %v1075_v43 = vsel %vm484_vm2, %v1004_v42, -inf }
 0x7a8   :  { %1073 = vmax.xlane.f32.xlu2 %v1072_v28 }
 0x7ac   :  { %v1061_v31 = vpop.f32.mrf.mxu3 }
 0x7ad   :  { %v1062_v32 = vadd.f32 %v1061_v31, %v923_v19 }
 0x7af   :  { %v1084_v33 = vsel %vm484_vm2, %v1062_v32, -inf }
 0x7b0   :  { %1085 = vmax.xlane.f32.xlu1 %v1084_v33  ;;  %1067 = vmax.xlane.f32.xlu2 %v1066_v35 }
 0x7b4   :  { %v1063_v37 = vpop.f32.mrf.mxu3 }
 0x7b5   :  { %v1064_v38 = vadd.f32 %v1063_v37, %v924_v22 }
 0x7b7   :  { %v1087_v39 = vsel %vm484_vm2, %v1064_v38, -inf }
 0x7b8   :  { %1088 = vmax.xlane.f32.xlu0 %v1087_v39 }
 0x7c0   :  { %1076 = vmax.xlane.f32.xlu0 %v1075_v43 }
 0x7c8   :  { %1070 = vmax.xlane.f32.xlu0 %v1069_v47 }
 0x80b   :  { %v1080_v48 = vpop.xlane.xlu0 %1079 }
 0x80c   :  { %v1094_v49 = vsub.f32 %v1032_v21, %v1080_v48 }
 0x80e   :  { %v1106_v50 = vmul.f32 1.442695, %v1094_v49 }
 0x810   :  { %1819 = vpow2.f32 %v1106_v50 }
 0x813   :  { %v1083_v51 = vpop.xlane.xlu2 %1082 }
 0x814   :  { %v1095_v54 = vsub.f32 %v1034_v25, %v1083_v51 }
 0x816   :  { %v2632_v52 = vpop.eup %1819  ;;  %v1108_v53 = vmul.f32 1.442695, %v1095_v54 }
 0x817   :  { %v1126_v36 = vsel %vm484_vm2, %v2632_v52, 0.0 }
 0x818   :  { %1127 = vadd.xlane.f32.xlu1 %v1126_v36 }
 0x81b   :  { %v1074_v41 = vpop.xlane.xlu2 %1073 }
 0x81c   :  { %v1092_v15 = vsub.f32 %v1002_v27, %v1074_v41 }
 0x81e   :  { %v1102_v55 = vmul.f32 1.442695, %v1092_v15 }
 0x820   :  { %1821 = vpow2.f32 %v1102_v55 }
 0x821   :  { %1823 = vpow2.f32 %v1108_v53 }
 0x823   :  { %v1086_v56 = vpop.xlane.xlu1 %1085  ;;  %v1068_v18 = vpop.xlane.xlu2 %1067 }
 0x824   :  { %v1096_v57 = vsub.f32 %v1062_v32, %v1086_v56  ;;  %v1090_v19 = vsub.f32 %v2624_v30, %v1068_v18 }
 0x826   :  { %v2636_v58 = vpop.eup %1821  ;;  %v1110_v59 = vmul.f32 1.442695, %v1096_v57  ;;  %v1098_v2 = vmul.f32 1.442695, %v1090_v19 }
 0x827   :  { %v1120_v60 = vsel %vm484_vm2, %v2636_v58, 0.0  ;;  %v2640_v0 = vpop.eup %1823 }
 0x828   :  { %1825 = vpow2.f32 %v1110_v59  ;;  %1121 = vadd.xlane.f32.xlu2 %v1120_v60  ;;  %v1129_v7 = vsel %vm484_vm2, %v2640_v0, 0.0 }
 0x82b   :  { %v1089_v61 = vpop.xlane.xlu0 %1088 }
 0x82c   :  { %v1097_v1 = vsub.f32 %v1064_v38, %v1089_v61 }
 0x82e   :  { %v1826_v4 = vpop.eup %1825  ;;  %v1112_v5 = vmul.f32 1.442695, %v1097_v1 }
 0x82f   :  { %v1132_v6 = vsel %vm484_vm2, %v1826_v4, 0.0 }
 0x830   :  { %1827 = vpow2.f32 %v1112_v5  ;;  %1133 = vadd.xlane.f32.xlu0 %v1132_v6  ;;  %1130 = vadd.xlane.f32.xlu2 %v1129_v7 }
 0x833   :  { %v1077_v8 = vpop.xlane.xlu0 %1076 }
 0x834   :  { %v1093_v9 = vsub.f32 %v1004_v42, %v1077_v8 }
 0x836   :  { %v1828_v10 = vpop.eup %1827  ;;  %v1104_v11 = vmul.f32 1.442695, %v1093_v9 }
 0x837   :  { %v1135_v12 = vsel %vm484_vm2, %v1828_v10, 0.0 }
 0x838   :  { %1829 = vpow2.f32 %v1104_v11  ;;  %1136 = vadd.xlane.f32.xlu1 %v1135_v12 }
 0x839   :  { %1831 = vpow2.f32 %v1098_v2 }
 0x83b   :  { %v1071_v20 = vpop.xlane.xlu0 %1070 }
 0x83c   :  { %v1091_v21 = vsub.f32 %v974_v46, %v1071_v20 }
 0x83e   :  { %v1830_v14 = vpop.eup %1829  ;;  %v1100_v22 = vmul.f32 1.442695, %v1091_v21 }
 0x83f   :  { %v1123_v17 = vsel %vm484_vm2, %v1830_v14, 0.0  ;;  %v1832_v24 = vpop.eup %1831 }
 0x840   :  { %1124 = vadd.xlane.f32.xlu0 %v1123_v17  ;;  %1833 = vpow2.f32 %v1100_v22 }
 0x848   :  { %1242 = vrot.lane.b32.xlu2 %v2614_v23, %s2285_s27  ;;  %v2656_v23 = vpop.eup %1833 }
 0x850   :  { %1167 = vrot.lane.b32.xlu2 %v2598_v13, %s2285_s27  ;;  %v1114_v13 = vsel %vm484_vm2, %v1832_v24, 0.0 }
 0x851   :  { %1217 = vrot.lane.b32.xlu1 %v2606_v34, %s2285_s27  ;;  %v1117_v34 = vsel %vm484_vm2, %v2656_v23, 0.0 }
 0x854   :  { %1192 = vrot.lane.b32.xlu0 %v2610_v45, %s2285_s27  ;;  %s1538_s27 = sshll.u32 %s2288_s29, 4  ;;  %s1539_s27 = int_to_ptr.vmem [resolvable:$true] %s1538_s27 }
 0x87b   :  { %1115 = vadd.xlane.f32.xlu1 %v1114_v13 }
 0x87e   :  { %1118 = vadd.xlane.f32.xlu0 %v1117_v34 }
 0x88b   :  { %v1128_v25 = vpop.xlane.xlu1 %1127 }
 0x89b   :  { %v1122_v45 = vpop.xlane.xlu2 %1121 }
 0x8a3   :  { %v1134_v3 = vpop.xlane.xlu0 %1133  ;;  %v1131_v26 = vpop.xlane.xlu2 %1130 }
 0x8a4   :  { %1835 = vrcp.f32 %v1134_v3 }
 0x8aa   :  { %v1836_v29 = vpop.eup %1835 }
 0x8ab   :  { %v1137_v27 = vpop.xlane.xlu1 %1136  ;;  %v1243_v28 = vpop.permute.xlu2 %1242  ;;  %v1152_v30 = vmul.f32 %v1836_v29, %v1826_v4 }
 0x8ac   :  { %1837 = vrcp.f32 %v1137_v27  ;;  %1255 = vmatpush.bf16.msra.mxu3 %v1243_v28 }
 0x8ad   :  { %1839 = vrcp.f32 %v1131_v26  ;;  %v1160_v32 = vpack.c.bf16 %v1152_v30, %v1152_v30 }
 0x8ae   :  { %1841 = vrcp.f32 %v1128_v25 }
 0x8af   :  { %v1239_v40 = vunpack.c.l.b16 %v1160_v32 }
 0x8b2   :  { %v1838_v31 = vpop.eup %1837 }
 0x8b3   :  { %v1153_v33 = vmul.f32 %v1838_v31, %v1828_v10  ;;  %v1125_v35 = vpop.xlane.xlu0 %1124  ;;  %v1168_v37 = vpop.permute.xlu2 %1167 }
 0x8b4   :  { %1843 = vrcp.f32 %v1125_v35  ;;  %1180 = vmatpush.bf16.msra.mxu0 %v1168_v37  ;;  %v1840_v39 = vpop.eup %1839 }
 0x8b5   :  { %1845 = vrcp.f32 %v1122_v45  ;;  %v1161_v38 = vpack.c.bf16 %v1153_v33, %v1153_v33  ;;  %v1842_v43 = vpop.eup %1841  ;;  %v1151_v44 = vmul.f32 %v1840_v39, %v2640_v0 }
 0x8b6   :  { %v1150_v49 = vmul.f32 %v1842_v43, %v2632_v52 }
 0x8b7   :  { %v1240_v42 = vunpack.c.l.b16 %v1161_v38  ;;  %v1159_v51 = vpack.c.bf16 %v1151_v44, %v1151_v44 }
 0x8b8   :  { %v1158_v41 = vpack.c.bf16 %v1150_v49, %v1150_v49 }
 0x8b9   :  { %v1241_v46 = vpack.c.b16 %v1240_v42, %v1239_v40  ;;  %v1215_v54 = vunpack.c.l.b16 %v1159_v51  ;;  %v1774_v42 = vld [vmem:[#allocation19] ss:$0 sm:$0xff] }
 0x8ba   :  { %v1844_v47 = vpop.eup %1843  ;;  %v1214_v53 = vunpack.c.l.b16 %v1158_v41 }
 0x8bb   :  { %v1846_v48 = vpop.eup %1845  ;;  %1613 = vmatmul.msk.bf16.vlgmr.msra.gmra.mxu3 %vm484_vm2, %v1241_v46  ;;  %v1149_v50 = vmul.f32 %v1844_v47, %v1830_v14 }
 0x8bc   :  { %v1148_v36 = vmul.f32 %v1846_v48, %v2636_v58  ;;  %v1216_v59 = vpack.c.b16 %v1215_v54, %v1214_v53 }
 0x8bd   :  { %v1157_v15 = vpack.c.bf16 %v1149_v50, %v1149_v50 }
 0x8be   :  { %v1156_v55 = vpack.c.bf16 %v1148_v36, %v1148_v36 }
 0x8bf   :  { %v1190_v57 = vunpack.c.l.b16 %v1157_v15 }
 0x8c0   :  { %v1189_v60 = vunpack.c.l.b16 %v1156_v55 }
 0x8c2   :  { %v1191_v52 = vpack.c.b16 %v1190_v57, %v1189_v60 }
 0x8c3   :  { %v1218_v56 = vpop.permute.xlu1 %1217 }
 0x8c4   :  { %1230 = vmatpush.bf16.msra.mxu2 %v1218_v56 }
 0x8c6   :  { %v1193_v61 = vpop.permute.xlu0 %1192 }
 0x8c7   :  { %1205 = vmatpush.bf16.msra.mxu1 %v1193_v61  ;;  %1612 = vmatmul.msk.bf16.vlgmr.msra.gmra.mxu2 %vm484_vm2, %v1216_v59 }
 0x8ca   :  { %1611 = vmatmul.msk.bf16.vlgmr.msra.gmra.mxu1 %vm484_vm2, %v1191_v52 }
 0x8ee   :  { %v1116_v0 = vpop.xlane.xlu1 %1115 }
 0x8ef   :  { %1847 = vrcp.f32 %v1116_v0  ;;  %v1659_v0 = vld [vmem:[#allocation20] sm:$0xff] }
 0x8f1   :  { %v1119_v58 = vpop.xlane.xlu0 %1118 }
 0x8f2   :  { %1849 = vrcp.f32 %v1119_v58 }
 0x8f5   :  { %v1848_v1 = vpop.eup %1847 }
 0x8f6   :  { %v1146_v4 = vmul.f32 %v1848_v1, %v1832_v24  ;;  %v1658_v24 = vld [vmem:[#allocation17 + $0x8] sm:$0xff] }
 0x8f7   :  { %1317 = vmatpush.bf16.msrb.mxu0 %v1658_v24  ;;  %v1776_v24 = vld [vmem:[#allocation25 + $0x1] ss:$0 sm:$0xff] }
 0x8f8   :  { %v1850_v5 = vpop.eup %1849  ;;  %v1154_v6 = vpack.c.bf16 %v1146_v4, %v1146_v4 }
 0x8f9   :  { %v1147_v7 = vmul.f32 %v1850_v5, %v2656_v23  ;;  %v1657_v23 = vld [vmem:[#allocation17] sm:$0xff] }
 0x8fa   :  { %v1164_v9 = vunpack.c.l.b16 %v1154_v6 }
 0x8fb   :  { %v1155_v8 = vpack.c.bf16 %v1147_v7, %v1147_v7  ;;  %1318 = vmatpush.bf16.msrb.mxu0 %v1657_v23 }
 0x8fd   :  { %v1165_v10 = vunpack.c.l.b16 %v1155_v8 }
 0x8ff   :  { %v1166_v11 = vpack.c.b16 %v1165_v10, %v1164_v9 }
 0x901   :  { %1610 = vmatmul.msk.bf16.vlgmr.msra.gmra.mxu0 %vm484_vm2, %v1166_v11 }
 0x93e   :  { %v1257_v19 = vpop.f32.mrf.mxu3 }
 0x946   :  { %v1259_v2 = vpop.f32.mrf.mxu3 }
 0x947   :  { %v1207_v12 = vpop.f32.mrf.mxu1  ;;  %v1763_v22 = vpack.i.bf16 %v1259_v2, %v1257_v19 }
 0x94a   :  { %v1232_v14 = vpop.f32.mrf.mxu2 }
 0x94f   :  { %v1209_v17 = vpop.f32.mrf.mxu1 }
 0x950   :  { %v1753_v18 = vpack.i.bf16 %v1209_v17, %v1207_v12 }
 0x952   :  { %1754 = vrot.lane.b32.xlu2 %v1753_v18, %s2272_s17  ;;  %v1234_v20 = vpop.f32.mrf.mxu2 }
 0x953   :  { %v1758_v21 = vpack.i.bf16 %v1234_v20, %v1232_v14  ;;  %v1775_v20 = vld [vmem:[%s2742_s18 + $0x1] ss:$0 sm:$0xff] }
 0x95a   :  { %1759 = vrot.lane.b32.xlu2 %v1758_v21, %s2280_s3 }
 0x962   :  { %1764 = vrot.lane.b32.xlu2 %v1763_v22, %s2286_s28 }
 0x97e   :  { %v1182_v34 = vpop.f32.mrf.mxu0 }
 0x986   :  { %v1184_v28 = vpop.f32.mrf.mxu0 }
 0x9ac   :  { %v1755_v13 = vpop.permute.xlu2 %1754 }
 0x9ad   :  { %v1757_v25 = vunpack.i.h.bf16 %v1755_v13  ;;  %v1756_v3 = vunpack.i.l.bf16 %v1755_v13 }
 0x9af   :  { %v1287_v30 = vsel %vm382_vm1, %v1184_v28, %v1757_v25  ;;  %v1286_v31 = vsel %vm382_vm1, %v1182_v34, %v1756_v3  ;;  %v1662_v28 = vld [vmem:[%s2740_s16 + $0x8] sm:$0xff] }
 0x9b4   :  { %v1760_v45 = vpop.permute.xlu2 %1759 }
 0x9b5   :  { %v1762_v26 = vunpack.i.h.bf16 %v1760_v45  ;;  %v1761_v27 = vunpack.i.l.bf16 %v1760_v45 }
 0x9b7   :  { %v1288_v35 = vsel %vm484_vm2, %v1286_v31, %v1761_v27  ;;  %v1289_v37 = vsel %vm484_vm2, %v1287_v30, %v1762_v26  ;;  %v1664_v26 = vld [vmem:[%s2740_s16 + $0x18] sm:$0xff]  ;;  %v1663_v27 = vld [vmem:[%s2740_s16 + $0x10] sm:$0xff]  ;;  %vm1458_vm2 = vcmask 523264  }
 0x9b8   :  { %1466 = vmatpush.bf16.msrb.mxu2 %v1664_v26  ;;  %v1777_v31 = vld [vmem:[#allocation22] ss:$0 sm:$0xff] }
 0x9bc   :  { %v1765_v29 = vpop.permute.xlu2 %1764  ;;  %1467 = vmatpush.bf16.msrb.mxu2 %v1663_v27 }
 0x9bd   :  { %v1767_v32 = vunpack.i.h.bf16 %v1765_v29  ;;  %v1766_v33 = vunpack.i.l.bf16 %v1765_v29  ;;  %v1661_v29 = vld [vmem:[%s2740_s16] sm:$0xff] }
 0x9bf   :  { %v1290_v38 = vsel %vm709_vm3, %v1288_v35, %v1766_v33  ;;  %v1291_v39 = vsel %vm709_vm3, %v1289_v37, %v1767_v32 }
 0x9c0   :  { %v1292_v40 = vpack.c.bf16 %v1291_v39, %v1290_v38  ;;  %1468 = vmatpush.bf16.msrb.mxu2 %v1662_v28 }
 0x9c2   :  { %1622 = vmatmul.msk.bf16.vlgmr.msrb.gmra.mxu0 %vm322_vm0, %v1292_v40  ;;  %v1778_v40 = vld [vmem:[#allocation23] ss:$0 sm:$0xff] }
 0x9c4   :  { %1469 = vmatpush.bf16.msrb.mxu2 %v1661_v29 }
 0xa3f   :  { %v1320_v43 = vpop.f32.mrf.mxu0 }
 0xa40   :  { %v1321_v44 = vadd.f32 %v1774_v42, %v1320_v43 }
 0xa42   :  { %v1325_v46 = vadd.f32 %v1321_v44, %v2588_v62 }
 0xa44   :  { %v1327_v47 = vsel %vm322_vm0, %v1325_v46, 0.0 }
 0xa45   :  { %1328 = vadd.xlane.f32.xlu2 %v1327_v47 }
 0xa47   :  { %v1322_v48 = vpop.f32.mrf.mxu0 }
 0xa48   :  { %v1323_v49 = vadd.f32 %v1774_v42, %v1322_v48 }
 0xa4a   :  { %v1326_v50 = vadd.f32 %v1323_v49, %v2590_v63  ;;  %v1660_v63 = vld [vmem:[#allocation20 + $0x8] sm:$0xff] }
 0xa4b   :  { %1411 = vmatpush.bf16.msrb.mxu1 %v1660_v63 }
 0xa4c   :  { %v1330_v51 = vsel %vm322_vm0, %v1326_v50, 0.0 }
 0xa4d   :  { %1331 = vadd.xlane.f32.xlu1 %v1330_v51 }
 0xa4f   :  { %1412 = vmatpush.bf16.msrb.mxu1 %v1659_v0 }
 0xab8   :  { %v1329_v36 = vpop.xlane.xlu2 %1328 }
 0xab9   :  { %v1333_v41 = vmul.f32 %v1329_v36, %v2570_v16 }
 0xabb   :  { %v1335_v15 = vsub.f32 %v1325_v46, %v1333_v41 }
 0xabd   :  { %v1337_v54 = vmul.f32 %v1335_v15, %v1335_v15 }
 0xabf   :  { %v1339_v55 = vsel %vm322_vm0, %v1337_v54, 0.0 }
 0xac0   :  { %v1332_v53 = vpop.xlane.xlu1 %1331  ;;  %1340 = vadd.xlane.f32.xlu0 %v1339_v55 }
 0xac1   :  { %v1334_v62 = vmul.f32 %v1332_v53, %v2570_v16 }
 0xac3   :  { %v1336_v56 = vsub.f32 %v1326_v50, %v1334_v62 }
 0xac5   :  { %v1338_v57 = vmul.f32 %v1336_v56, %v1336_v56 }
 0xac7   :  { %v1342_v59 = vsel %vm322_vm0, %v1338_v57, 0.0 }
 0xac8   :  { %1343 = vadd.xlane.f32.xlu1 %v1342_v59 }
 0xb33   :  { %v1341_v60 = vpop.xlane.xlu0 %1340 }
 0xb34   :  { %v1345_v61 = vmul.f32 %v1341_v60, %v2570_v16 }
 0xb36   :  { %v1347_v52 = vadd.f32 1e-05, %v1345_v61 }
 0xb38   :  { %1851 = vrsqrt.f32 %v1347_v52  ;;  %vm1355_vm12 = vweird.f32 %v1347_v52 }
 0xb3b   :  { %v1344_v58 = vpop.xlane.xlu1 %1343 }
 0xb3c   :  { %v1346_v1 = vmul.f32 %v1344_v58, %v2570_v16 }
 0xb3e   :  { %v1852_v4 = vpop.eup %1851  ;;  %v1348_v5 = vadd.f32 1e-05, %v1346_v1 }
 0xb3f   :  { %v1350_v6 = vmul.f32 %v1852_v4, %v1347_v52  ;;  %vm1356_vm11 = vweird.f32 %v1852_v4 }
 0xb40   :  { %1853 = vrsqrt.f32 %v1348_v5  ;;  %vm1357_vm13 = vmor %vm1355_vm12, %vm1356_vm11  ;;  %vm1365_vm15 = vweird.f32 %v1348_v5 }
 0xb41   :  { %v1351_v7 = vmul.f32 %v1852_v4, %v1350_v6 }
 0xb43   :  { %v1352_v8 = vmul.f32 0.5, %v1351_v7 }
 0xb45   :  { %v1353_v9 = vsub.f32 1.5, %v1352_v8 }
 0xb46   :  { %v1854_v10 = vpop.eup %1853 }
 0xb47   :  { %v1354_v11 = vmul.f32 %v1852_v4, %v1353_v9  ;;  %v1360_v12 = vmul.f32 %v1854_v10, %v1348_v5  ;;  %vm1366_vm14 = vweird.f32 %v1854_v10 }
 0xb48   :  { %vm1367_vm1 = vmor %vm1365_vm15, %vm1366_vm14 }
 0xb49   :  { %v1361_v14 = vmul.f32 %v1854_v10, %v1360_v12  ;;  %v1358_v17 = vsel %vm1357_vm13, %v1852_v4, %v1354_v11 }
 0xb4a   :  { %v1369_v21 = vmul.f32 %v1358_v17, %v1335_v15 }
 0xb4b   :  { %v1362_v18 = vmul.f32 0.5, %v1361_v14  ;;  %v1780_v14 = vld [vmem:[#allocation25 + $0x2] ss:$0 sm:$0xff] }
 0xb4c   :  { %v1374_v23 = vmul.f32 %v1775_v20, %v1369_v21 }
 0xb4d   :  { %v1363_v19 = vsub.f32 1.5, %v1362_v18 }
 0xb4e   :  { %v1379_v45 = vadd.f32 %v1776_v24, %v1374_v23 }
 0xb4f   :  { %v1364_v2 = vmul.f32 %v1854_v10, %v1363_v19 }
 0xb51   :  { %v1368_v22 = vsel %vm1367_vm1, %v1854_v10, %v1364_v2  ;;  %v1779_v10 = vld [vmem:[%s2742_s18 + $0x2] ss:$0 sm:$0xff] }
 0xb52   :  { %v1370_v13 = vmul.f32 %v1368_v22, %v1336_v56 }
 0xb54   :  { %v1375_v34 = vmul.f32 %v1775_v20, %v1370_v13 }
 0xb56   :  { %v1380_v25 = vadd.f32 %v1776_v24, %v1375_v34 }
 0xb58   :  { %v1381_v3 = vpack.c.bf16 %v1380_v25, %v1379_v45 }
 0xb5a   :  { %1631 = vmatmul.msk.bf16.vlgmr.msrb.gmra.mxu1 %vm322_vm0, %v1381_v3 }
 0xbd7   :  { %v1414_v30 = vpop.f32.mrf.mxu1 }
 0xbd8   :  { %v1415_v32 = vadd.f32 %v1777_v31, %v1414_v30 }
 0xbda   :  { %v1419_v37 = vmax.f32 %v1415_v32, 0.0 }
 0xbdf   :  { %v1416_v33 = vpop.f32.mrf.mxu1 }
 0xbe0   :  { %v1417_v35 = vadd.f32 %v1777_v31, %v1416_v33 }
 0xbe2   :  { %v1420_v38 = vmax.f32 %v1417_v35, 0.0 }
 0xbe4   :  { %v1421_v39 = vpack.c.bf16 %v1420_v38, %v1419_v37 }
 0xbe6   :  { %1648 = vmatmul.msk.bf16.vlgmr.msrb.gmra.mxu2 %vm1458_vm2, %v1421_v39 }
 0xc69   :  { %v1471_v42 = vpop.f32.mrf.mxu2 }
 0xc6a   :  { %v1472_v43 = vadd.f32 %v1778_v40, %v1471_v42 }
 0xc6c   :  { %v1476_v44 = vadd.f32 %v1472_v43, %v1379_v45 }
 0xc6e   :  { %v1478_v46 = vsel %vm322_vm0, %v1476_v44, 0.0 }
 0xc6f   :  { %1479 = vadd.xlane.f32.xlu0 %v1478_v46 }
 0xc71   :  { %v1473_v47 = vpop.f32.mrf.mxu2 }
 0xc72   :  { %v1474_v48 = vadd.f32 %v1778_v40, %v1473_v47 }
 0xc74   :  { %v1477_v49 = vadd.f32 %v1474_v48, %v1380_v25 }
 0xc76   :  { %v1481_v50 = vsel %vm322_vm0, %v1477_v49, 0.0 }
 0xc77   :  { %1482 = vadd.xlane.f32.xlu1 %v1481_v50 }
 0xce2   :  { %v1480_v51 = vpop.xlane.xlu0 %1479 }
 0xce3   :  { %v1484_v36 = vmul.f32 %v1480_v51, %v2570_v16 }
 0xce5   :  { %v1486_v41 = vsub.f32 %v1476_v44, %v1484_v36 }
 0xce7   :  { %v1488_v15 = vmul.f32 %v1486_v41, %v1486_v41 }
 0xce9   :  { %v1490_v54 = vsel %vm322_vm0, %v1488_v15, 0.0 }
 0xcea   :  { %v1483_v55 = vpop.xlane.xlu1 %1482  ;;  %1491 = vadd.xlane.f32.xlu0 %v1490_v54 }
 0xceb   :  { %v1485_v53 = vmul.f32 %v1483_v55, %v2570_v16 }
 0xced   :  { %v1487_v62 = vsub.f32 %v1477_v49, %v1485_v53 }
 0xcef   :  { %v1489_v56 = vmul.f32 %v1487_v62, %v1487_v62 }
 0xcf1   :  { %v1493_v57 = vsel %vm322_vm0, %v1489_v56, 0.0 }
 0xcf2   :  { %1494 = vadd.xlane.f32.xlu1 %v1493_v57 }
 0xd5d   :  { %v1492_v59 = vpop.xlane.xlu0 %1491 }
 0xd5e   :  { %v1496_v63 = vmul.f32 %v1492_v59, %v2570_v16 }
 0xd60   :  { %v1498_v60 = vadd.f32 1e-05, %v1496_v63 }
 0xd62   :  { %1855 = vrsqrt.f32 %v1498_v60  ;;  %vm1506_vm4 = vweird.f32 %v1498_v60 }
 0xd65   :  { %v1495_v61 = vpop.xlane.xlu1 %1494 }
 0xd66   :  { %v1497_v52 = vmul.f32 %v1495_v61, %v2570_v16 }
 0xd68   :  { %v1856_v0 = vpop.eup %1855  ;;  %v1499_v58 = vadd.f32 1e-05, %v1497_v52 }
 0xd69   :  { %v1501_v1 = vmul.f32 %v1856_v0, %v1498_v60  ;;  %vm1507_vm3 = vweird.f32 %v1856_v0 }
 0xd6a   :  { %1857 = vrsqrt.f32 %v1499_v58  ;;  %vm1508_vm5 = vmor %vm1506_vm4, %vm1507_vm3  ;;  %vm1516_vm7 = vweird.f32 %v1499_v58 }
 0xd6b   :  { %v1502_v4 = vmul.f32 %v1856_v0, %v1501_v1 }
 0xd6d   :  { %v1503_v5 = vmul.f32 0.5, %v1502_v4 }
 0xd6f   :  { %v1504_v6 = vsub.f32 1.5, %v1503_v5 }
 0xd70   :  { %v1858_v7 = vpop.eup %1857 }
 0xd71   :  { %v1505_v8 = vmul.f32 %v1856_v0, %v1504_v6  ;;  %v1511_v9 = vmul.f32 %v1858_v7, %v1499_v58  ;;  %vm1517_vm6 = vweird.f32 %v1858_v7 }
 0xd72   :  { %vm1518_vm8 = vmor %vm1516_vm7, %vm1517_vm6 }
 0xd73   :  { %v1509_v11 = vsel %vm1508_vm5, %v1856_v0, %v1505_v8  ;;  %v1512_v12 = vmul.f32 %v1858_v7, %v1511_v9 }
 0xd74   :  { %v1520_v16 = vmul.f32 %v1509_v11, %v1486_v41 }
 0xd75   :  { %v1513_v17 = vmul.f32 0.5, %v1512_v12 }
 0xd76   :  { %v1525_v18 = vmul.f32 %v1779_v10, %v1520_v16 }
 0xd77   :  { %v1514_v19 = vsub.f32 1.5, %v1513_v17 }
 0xd78   :  { %v1530_v20 = vadd.f32 %v1780_v14, %v1525_v18 }
 0xd79   :  { %v1515_v21 = vmul.f32 %v1858_v7, %v1514_v19 }
 0xd7a   :  { %1532 = vst.msk [vmem:[#allocation26] sm:$0xff] %vm322_vm0, %v1530_v20 }
 0xd7b   :  { %v1519_v2 = vsel %vm1518_vm8, %v1858_v7, %v1515_v21 }
 0xd7c   :  { %v1521_v22 = vmul.f32 %v1519_v2, %v1487_v62 }
 0xd7e   :  { %v1526_v24 = vmul.f32 %v1779_v10, %v1521_v22 }
 0xd80   :  { %v1531_v23 = vadd.f32 %v1780_v14, %v1526_v24 }
 0xd82   :  { %1533 = vst.msk [vmem:[#allocation26 + $0x8] sm:$0xff] %vm322_vm0, %v1531_v23 }
 0xd83   :  { %1546 = dma.vmem_to_hbm [thread:$0]  %s1539_s27, 256, %s1541_s30, [#allocation4], %s2271_s10, %s2271_s10, %s2272_s17  }
 0xd84   :  { %2259 = dma.done.wait [#allocation4], 256  }
 0xd85   :  { %2260 = vsyncadd [#allocation4], 4294967040 }
 0xd86   :  { %1551 = vsyncpa [#allocation3], 1 }
 0xd87   :  { %1552 = vsyncpa [#allocation6], 1 }
 0xd88   :  { %1553 = vsyncpa [#allocation9], 1 }
 0xd89   :  { %1554 = vsyncpa [#allocation12], 1 }
 0xd8a   :  { %1555 = vsyncpa [#allocation15], 1 }
 0xd8b   :  { %1556 = vsyncpa [#allocation18], 1 }
 0xd8c   :  { %1557 = vsyncpa [#allocation21], 1 }
 0xd8d   :  { %1558 = vsyncpa [#allocation24], 1 }
 0xd8e   :  { %1559 = vsyncpa [#allocation4], 1 }

</bundles_post_ra>
